<compile_context>
chip_gen: v5e
topology: v5e:2x2
jax: 0.10.0
libtpu: 0.0.40
codegen_flags: <defaults>
</compile_context>

<pallas_src>
import math

import jax
import jax.numpy as jnp
from jax.experimental import pallas as pl
from jax.experimental.pallas import tpu as pltpu

_EPS = 1e-5
# Scoped VMEM limit that is safe on every generation (v7x has 64 MiB physical
# per TensorCore); raise towards ~96-110 MiB on v5e/v6e for larger HW tiles.
_VMEM_LIMIT = 64 * 1024 * 1024


def _pick_hw_tile(n, requested):
    """Largest lane-aligned HW tile <= requested that divides n."""
    t = min(requested, n)
    if n % t == 0 and (t % 128 == 0 or t == n):
        return t
    for cand in range((t // 128) * 128, 0, -128):
        if n % cand == 0:
            return cand
    # TODO(synk): masked ragged-tail tiles instead of falling back to one tile.
    return n


# --------------------- pass 1: BN2d batch statistics ---------------------
def _stats_kernel(x_ref, w_ref, sum_ref, ssq_ref):
    """Per-channel sum / sum-sq of t = conv1x1(x), accumulated over the grid."""

    @pl.when((pl.program_id(0) == 0) & (pl.program_id(1) == 0))
    def _init():
        sum_ref[...] = jnp.zeros_like(sum_ref)
        ssq_ref[...] = jnp.zeros_like(ssq_ref)

    t = jnp.dot(w_ref[...], x_ref[0], preferred_element_type=jnp.float32)  # (C, TN)
    sum_ref[...] += jnp.sum(t, axis=1, keepdims=True)
    ssq_ref[...] += jnp.sum(t * t, axis=1, keepdims=True)


# ------------- pass 2: encoding (soft-assign + residual aggregation) -------------
def _make_encode_kernel(inv_cnt, mxu_dtype):
    def kernel(x_ref, w_ref, sum_ref, ssq_ref, g2_ref, b2_ref,
               mxc_ref, s2_ref, slb_ref, codes_ref, e_ref, asum_ref):
        nt = pl.program_id(1)

        @pl.when(nt == 0)
        def _init():
            e_ref[...] = jnp.zeros_like(e_ref)
            asum_ref[...] = jnp.zeros_like(asum_ref)

        # BN2d (training-mode batch stats, biased var) + ReLU; conv recomputed per tile.
        mu = sum_ref[...] * inv_cnt                                    # (C, 1)
        var = jnp.maximum(ssq_ref[...] * inv_cnt - mu * mu, 0.0)
        scale = jax.lax.rsqrt(var + _EPS) * g2_ref[...]
        t = jnp.dot(w_ref[...], x_ref[0], preferred_element_type=jnp.float32)
        t = jnp.maximum((t - mu) * scale + b2_ref[...], 0.0)           # (C, TN) f32

        # Scaled-L2 logits: sl[k, n] = s_k^2 * (||t_n||^2 - 2 c_k.t_n + ||c_k||^2)
        # (pixels on lanes, codewords on sublanes).  ||t||^2 is a sublane reduce.
        tm = t.astype(mxu_dtype)
        tsq = jnp.sum(t * t, axis=0, keepdims=True)                    # (1, TN)
        ct = jnp.dot(mxc_ref[...], tm, preferred_element_type=jnp.float32)  # (K, TN)
        sl = s2_ref[...] * tsq + ct + slb_ref[...]                     # (K, TN)

        # Softmax over codewords (f32, exact division).
        sl = sl - jnp.max(sl, axis=0, keepdims=True)
        p = jnp.exp(sl)
        a = p / jnp.sum(p, axis=0, keepdims=True)                      # (K, TN)

        # Residual aggregation in the lane-dense (K, C) orientation
        # (contraction over the pixel/lane axis).
        e_ref[0] += jax.lax.dot_general(
            a.astype(mxu_dtype), tm, (((1,), (1,)), ((), ())),
            preferred_element_type=jnp.float32)                        # (K, C)
        asum_ref[...] += jnp.sum(a, axis=1, keepdims=True)             # (K, 1)

        @pl.when(nt == pl.num_programs(1) - 1)
        def _finalize():
            e_ref[0] -= asum_ref[...] * codes_ref[...]                 # e = sum_n a*(t - c)

    return kernel


# -------- pass 3 (tiny): BN1d + ReLU + mean over codes + fc gate + se head --------
def _make_epilogue_kernel(B, C, K):
    inv_bc = 1.0 / float(B * C)
    inv_k = 1.0 / float(K)

    def kernel(e_ref, g1_ref, b1_ref, fcw_ref, fcb_ref, sew_ref, seb_ref,
               gate_ref, se_ref):
        e = e_ref[...]                                                 # (B, K, C) f32
        # BN1d over codewords: stats over (batch, channel); two-pass variance.
        mu1 = jnp.sum(jnp.sum(e, axis=2, keepdims=True), axis=0, keepdims=True) * inv_bc
        d = e - mu1
        var1 = jnp.sum(jnp.sum(d * d, axis=2, keepdims=True), axis=0, keepdims=True) * inv_bc
        en_e = jnp.maximum(d * jax.lax.rsqrt(var1 + _EPS) * g1_ref[...] + b1_ref[...], 0.0)
        en = jnp.sum(en_e, axis=1) * inv_k                             # (B, C) mean over codes

        # gamma = sigmoid(en @ fc_w^T + fc_b);  gate = 1 + gamma (folds "+ x" residual).
        z = jax.lax.dot_general(en, fcw_ref[...], (((1,), (1,)), ((), ())),
                                preferred_element_type=jnp.float32) + fcb_ref[...]
        gate_ref[...] = 1.0 + jax.nn.sigmoid(z)                        # (B, C)
        # se logits, lane-dense (classes on lanes).
        se_ref[...] = jax.lax.dot_general(en, sew_ref[...], (((1,), (1,)), ((), ())),
                                          preferred_element_type=jnp.float32) + seb_ref[...]

    return kernel


# --------------------- pass 4: gated-residual ReLU (elementwise) ---------------------
def _apply_kernel(x_ref, gate_ref, out_ref):
    out_ref[0] = jnp.maximum(gate_ref[0] * x_ref[0].astype(jnp.float32), 0.0)


def enc_module_pallas(x_nchw, params, *, hw_tile=512, mxu_dtype=jnp.bfloat16):
    """EncModule forward. x_nchw: (B, C, H, W). Returns (relu(gamma*x + x), se_logits)."""
    B, C, H, W = x_nchw.shape
    N = H * W
    K = params['codes'].shape[0]
    NCLS = params['se_w'].shape[0]
    f32 = jnp.float32

    TN = _pick_hw_tile(N, hw_tile)   # on v7x (64 MiB VMEM) prefer hw_tile ~256
    NT = N // TN

    # Raw / tiny derived parameters (no kron(I_B, .) inflation; O(K*C) at most).
    x = x_nchw.reshape(B, C, N).astype(mxu_dtype)             # zero-copy view, pixels on lanes
    w = params['conv_w'].astype(mxu_dtype)                    # (C, C)
    codes = params['codes'].astype(f32)                       # (K, C)
    s2 = (params['scale'].astype(f32) ** 2).reshape(K, 1)     # (K, 1)
    mxc = (-2.0 * s2 * codes).astype(mxu_dtype)               # (K, C): -2 s^2 c
    slb = s2 * jnp.sum(codes * codes, axis=1, keepdims=True)  # (K, 1): s^2 ||c||^2
    g2 = params['bn2_g'].astype(f32).reshape(C, 1)
    b2 = params['bn2_b'].astype(f32).reshape(C, 1)
    g1 = params['bn1_g'].astype(f32).reshape(K, 1)
    b1 = params['bn1_b'].astype(f32).reshape(K, 1)
    fcw = params['fc_w'].astype(f32)                          # (C, C)
    fcb = params['fc_b'].astype(f32).reshape(1, C)
    sew = params['se_w'].astype(f32)                          # (NCLS, C)
    seb = params['se_b'].astype(f32).reshape(1, NCLS)

    x_spec = pl.BlockSpec((1, C, TN), lambda b, n: (b, 0, n))

    def const(shape):                 # small resident operand, fetched once
        return pl.BlockSpec(shape, lambda b, n: (0, 0))

    # ---- pass 1: BN2d batch statistics ----
    ch_sum, ch_ssq = pl.pallas_call(
        _stats_kernel,
        grid=(B, NT),
        out_shape=(jax.ShapeDtypeStruct((C, 1), f32),
                   jax.ShapeDtypeStruct((C, 1), f32)),
        in_specs=[x_spec, const((C, C))],
        out_specs=(const((C, 1)), const((C, 1))),
        compiler_params=pltpu.CompilerParams(
            dimension_semantics=("arbitrary", "arbitrary"),
            vmem_limit_bytes=_VMEM_LIMIT),
    )(x, w)

    # ---- pass 2: encoding; e accumulated per batch as lane-dense (K, C) ----
    e = pl.pallas_call(
        _make_encode_kernel(1.0 / float(B * N), mxu_dtype),
        grid=(B, NT),
        out_shape=jax.ShapeDtypeStruct((B, K, C), f32),
        in_specs=[x_spec, const((C, C)), const((C, 1)), const((C, 1)),
                  const((C, 1)), const((C, 1)), const((K, C)),
                  const((K, 1)), const((K, 1)), const((K, C))],
        out_specs=pl.BlockSpec((1, K, C), lambda b, n: (b, 0, 0)),
        scratch_shapes=[pltpu.VMEM((K, 1), f32)],
        compiler_params=pltpu.CompilerParams(
            dimension_semantics=("parallel", "arbitrary"),
            vmem_limit_bytes=_VMEM_LIMIT),
    )(x, w, ch_sum, ch_ssq, g2, b2, mxc, s2, slb, codes)

    # ---- pass 3 (tiny, single invocation): BN1d + fc gate + se head ----
    vmem = pl.BlockSpec(memory_space=pltpu.MemorySpace.VMEM)
    gate, se = pl.pallas_call(
        _make_epilogue_kernel(B, C, K),
        out_shape=(jax.ShapeDtypeStruct((B, C), f32),
                   jax.ShapeDtypeStruct((B, NCLS), f32)),
        in_specs=[vmem] * 7,
        out_specs=(vmem, vmem),
        compiler_params=pltpu.CompilerParams(vmem_limit_bytes=_VMEM_LIMIT),
    )(e, g1, b1, fcw, fcb, sew, seb)

    # ---- pass 4: out0 = relu((1 + gamma) * x), fully parallel tiles ----
    out2 = pl.pallas_call(
        _apply_kernel,
        grid=(B, NT),
        out_shape=jax.ShapeDtypeStruct((B, C, N), f32),
        in_specs=[x_spec, pl.BlockSpec((1, C, 1), lambda b, n: (b, 0, 0))],
        out_specs=pl.BlockSpec((1, C, TN), lambda b, n: (b, 0, n)),
        compiler_params=pltpu.CompilerParams(
            dimension_semantics=("parallel", "parallel"),
            vmem_limit_bytes=_VMEM_LIMIT),
    )(x, gate.reshape(B, C, 1))

    return out2.reshape(B, C, H, W), se


def _reference(x, p):
    """Pure-JAX replica of the PyTorch forward (for verification)."""
    B, C, H, W = x.shape
    N = H * W
    t = jnp.einsum('oc,bchw->bohw', p['conv_w'], x)
    mu = t.mean(axis=(0, 2, 3), keepdims=True)
    var = ((t - mu) ** 2).mean(axis=(0, 2, 3), keepdims=True)
    t = (t - mu) / jnp.sqrt(var + _EPS)
    t = t * p['bn2_g'].reshape(1, C, 1, 1) + p['bn2_b'].reshape(1, C, 1, 1)
    t = jax.nn.relu(t)
    xf = jnp.transpose(t.reshape(B, C, N), (0, 2, 1))              # (B, N, C)
    diff = xf[:, :, None, :] - p['codes'][None, None, :, :]        # (B, N, K, C)
    sl = ((diff * p['scale'][None, None, :, None]) ** 2).sum(-1)   # (B, N, K)
    a = jax.nn.softmax(sl, axis=2)
    e = (diff * a[..., None]).sum(axis=1)                          # (B, K, C)
    mu1 = e.mean(axis=(0, 2), keepdims=True)
    var1 = ((e - mu1) ** 2).mean(axis=(0, 2), keepdims=True)
    e = (e - mu1) / jnp.sqrt(var1 + _EPS)
    e = e * p['bn1_g'].reshape(1, -1, 1) + p['bn1_b'].reshape(1, -1, 1)
    e = jax.nn.relu(e)
    en = e.mean(axis=1)                                            # (B, C)
    gamma = jax.nn.sigmoid(en @ p['fc_w'].T + p['fc_b'])
    out0 = jax.nn.relu(gamma.reshape(B, C, 1, 1) * x + x)
    se = en @ p['se_w'].T + p['se_b']
    return out0, se


if __name__ == "__main__":
    B, C, H, W = 2, 4, 16, 16      # batch=2, in_ch=4, spatial=16x16
    K, NCLS = 32, 5                # num_codes=32, n_classes=5

    key = jax.random.PRNGKey(0)
    k = jax.random.split(key, 8)
    std_c = 1.0 / math.sqrt(K * C)   # Encoding codes init
    std_l = 1.0 / math.sqrt(C)       # Linear / conv fan-in init

    params = {
        'conv_w': jax.random.uniform(k[0], (C, C), jnp.float32, -std_l, std_l),
        'bn2_g': jnp.ones((C,), jnp.float32),
        'bn2_b': jnp.zeros((C,), jnp.float32),
        'codes': jax.random.uniform(k[1], (K, C), jnp.float32, -std_c, std_c),
        'scale': jax.random.uniform(k[2], (K,), jnp.float32, 0.0, 1.0),
        'bn1_g': jnp.ones((K,), jnp.float32),
        'bn1_b': jnp.zeros((K,), jnp.float32),
        'fc_w': jax.random.uniform(k[3], (C, C), jnp.float32, -std_l, std_l),
        'fc_b': jax.random.uniform(k[4], (C,), jnp.float32, -std_l, std_l),
        'se_w': jax.random.uniform(k[5], (NCLS, C), jnp.float32, -std_l, std_l),
        'se_b': jax.random.uniform(k[6], (NCLS,), jnp.float32, -std_l, std_l),
    }
    x = jax.random.normal(k[7], (B, C, H, W), jnp.float32)

    r0, rse = _reference(x, params)

    # f32 MXU-operand path: strict correctness check against the pure-JAX reference.
    # hw_tile=128 forces 2 HW tiles so grid-carried accumulators are exercised.
    run_f32 = jax.jit(lambda xx, pp: enc_module_pallas(
        xx, pp, hw_tile=128, mxu_dtype=jnp.float32))
    out0, se = run_f32(x, params)
    jax.block_until_ready((out0, se))
    assert out0.shape == (B, C, H, W) and se.shape == (B, NCLS)
    assert bool(jnp.allclose(out0, r0, atol=2e-3, rtol=2e-3)), "out0 (f32) mismatch"
    assert bool(jnp.allclose(se, rse, atol=2e-3, rtol=2e-3)), "se (f32) mismatch"

    # bf16 MXU-operand path (the production configuration): coarse sanity check only;
    # the strict numerical gate is the f32 run above.
    run_bf16 = jax.jit(lambda xx, pp: enc_module_pallas(
        xx, pp, hw_tile=128, mxu_dtype=jnp.bfloat16))
    out0_b, se_b = run_bf16(x, params)
    jax.block_until_ready((out0_b, se_b))
    assert bool(jnp.allclose(out0_b, r0, atol=1e-1, rtol=1e-1)), "out0 (bf16) mismatch"
    assert bool(jnp.allclose(se_b, rse, atol=1e-1, rtol=1e-1)), "se (bf16) mismatch"

    print("KERNEL_OK")
</pallas_src>

<mosaic_0001>
module attributes {stable_mosaic.version = 11 : i64} {
  func.func @_stats_kernel(%arg0: i32, %arg1: i32, %arg2: memref<1x4x128xf32, #tpu.memory_space<vmem>>, %arg3: memref<4x4xf32, #tpu.memory_space<vmem>>, %arg4: memref<4x1xf32, #tpu.memory_space<vmem>>, %arg5: memref<4x1xf32, #tpu.memory_space<vmem>>) attributes {dimension_semantics = [#tpu.dimension_semantics<arbitrary>, #tpu.dimension_semantics<arbitrary>], iteration_bounds = array<i64: 2, 2>, scalar_prefetch = 0 : i64, scratch_operands = 0 : i64, tpu.core_type = #tpu.core_type<tc>, window_params = [{transform_indices = @transform_0, window_bounds = array<i64: 1, 4, 128>}, {pipeline_mode = #tpu.pipeline_mode<synchronous>, transform_indices = @transform_1, window_bounds = array<i64: 4, 4>}, {pipeline_mode = #tpu.pipeline_mode<synchronous>, transform_indices = @transform_2, window_bounds = array<i64: 4, 1>}, {pipeline_mode = #tpu.pipeline_mode<synchronous>, transform_indices = @transform_3, window_bounds = array<i64: 4, 1>}]} {
    %c0_i32 = arith.constant 0 : i32
    %0 = arith.cmpi eq, %arg0, %c0_i32 : i32
    %c0_i32_0 = arith.constant 0 : i32
    %1 = arith.cmpi eq, %arg1, %c0_i32_0 : i32
    %2 = arith.andi %0, %1 : i1
    %3 = arith.extui %2 : i1 to i32
    %c0_i32_1 = arith.constant 0 : i32
    %4 = arith.cmpi ne, %3, %c0_i32_1 : i32
    scf.if %4 {
      %cst_16 = arith.constant 0.000000e+00 : f32
      %20 = vector.broadcast %cst_16 : f32 to vector<4x1xf32>
      %c0_17 = arith.constant 0 : index
      %c0_18 = arith.constant 0 : index
      %21 = vector.load %arg4[%c0_17, %c0_18] : memref<4x1xf32, #tpu.memory_space<vmem>>, vector<4x1xf32>
      tpu.vector_store %arg4[%c0_17, %c0_18], %20 {strides = array<i32>} : memref<4x1xf32, #tpu.memory_space<vmem>>, vector<4x1xf32>,
      %cst_19 = arith.constant 0.000000e+00 : f32
      %22 = vector.broadcast %cst_19 : f32 to vector<4x1xf32>
      %c0_20 = arith.constant 0 : index
      %c0_21 = arith.constant 0 : index
      %23 = vector.load %arg5[%c0_20, %c0_21] : memref<4x1xf32, #tpu.memory_space<vmem>>, vector<4x1xf32>
      tpu.vector_store %arg5[%c0_20, %c0_21], %22 {strides = array<i32>} : memref<4x1xf32, #tpu.memory_space<vmem>>, vector<4x1xf32>,
    } else {
    }
    %c0 = arith.constant 0 : index
    %c0_2 = arith.constant 0 : index
    %5 = vector.load %arg3[%c0, %c0_2] : memref<4x4xf32, #tpu.memory_space<vmem>>, vector<4x4xf32>
    %c0_3 = arith.constant 0 : index
    %c0_4 = arith.constant 0 : index
    %c0_5 = arith.constant 0 : index
    %6 = vector.load %arg2[%c0_3, %c0_4, %c0_5] : memref<1x4x128xf32, #tpu.memory_space<vmem>>, vector<1x4x128xf32>
    %7 = vector.shape_cast %6 : vector<1x4x128xf32> to vector<4x128xf32>
    %cst = arith.constant dense<0.000000e+00> : vector<4x128xf32>
    %8 = tpu.matmul %5, %7, %cst {dimension_numbers = #tpu.dot_dimension_numbers<[1], [0], [0], [1], [0, 0, 1, 1], [], []>} : vector<4x4xf32>, vector<4x128xf32>, vector<4x128xf32> -> vector<4x128xf32>
    %c0_6 = arith.constant 0 : index
    %c0_7 = arith.constant 0 : index
    %9 = vector.load %arg4[%c0_6, %c0_7] : memref<4x1xf32, #tpu.memory_space<vmem>>, vector<4x1xf32>
    %cst_8 = arith.constant dense<0.000000e+00> : vector<4xf32>
    %10 = vector.multi_reduction <add>, %8, %cst_8 [1] : vector<4x128xf32> to vector<4xf32>
    %11 = vector.shape_cast %10 : vector<4xf32> to vector<4x1xf32>
    %12 = arith.addf %9, %11 : vector<4x1xf32>
    %c0_9 = arith.constant 0 : index
    %c0_10 = arith.constant 0 : index
    %13 = vector.load %arg4[%c0_9, %c0_10] : memref<4x1xf32, #tpu.memory_space<vmem>>, vector<4x1xf32>
    tpu.vector_store %arg4[%c0_9, %c0_10], %12 {strides = array<i32>} : memref<4x1xf32, #tpu.memory_space<vmem>>, vector<4x1xf32>,
    %c0_11 = arith.constant 0 : index
    %c0_12 = arith.constant 0 : index
    %14 = vector.load %arg5[%c0_11, %c0_12] : memref<4x1xf32, #tpu.memory_space<vmem>>, vector<4x1xf32>
    %15 = arith.mulf %8, %8 : vector<4x128xf32>
    %cst_13 = arith.constant dense<0.000000e+00> : vector<4xf32>
    %16 = vector.multi_reduction <add>, %15, %cst_13 [1] : vector<4x128xf32> to vector<4xf32>
    %17 = vector.shape_cast %16 : vector<4xf32> to vector<4x1xf32>
    %18 = arith.addf %14, %17 : vector<4x1xf32>
    %c0_14 = arith.constant 0 : index
    %c0_15 = arith.constant 0 : index
    %19 = vector.load %arg5[%c0_14, %c0_15] : memref<4x1xf32, #tpu.memory_space<vmem>>, vector<4x1xf32>
    tpu.vector_store %arg5[%c0_14, %c0_15], %18 {strides = array<i32>} : memref<4x1xf32, #tpu.memory_space<vmem>>, vector<4x1xf32>,
    return
  }
  func.func @transform_0(%arg0: i32, %arg1: i32) -> (i32, i32, i32) {
    %c0_i32 = arith.constant 0 : i32
    %c0_i32_0 = arith.constant 0 : i32
    return %arg0, %c0_i32, %arg1 : i32, i32, i32
  }
  func.func @transform_1(%arg0: i32, %arg1: i32) -> (i32, i32) {
    %c0_i32 = arith.constant 0 : i32
    %c0_i32_0 = arith.constant 0 : i32
    %c0_i32_1 = arith.constant 0 : i32
    return %c0_i32, %c0_i32_0 : i32, i32
  }
  func.func @transform_2(%arg0: i32, %arg1: i32) -> (i32, i32) {
    %c0_i32 = arith.constant 0 : i32
    %c0_i32_0 = arith.constant 0 : i32
    %c0_i32_1 = arith.constant 0 : i32
    return %c0_i32, %c0_i32_0 : i32, i32
  }
  func.func @transform_3(%arg0: i32, %arg1: i32) -> (i32, i32) {
    %c0_i32 = arith.constant 0 : i32
    %c0_i32_0 = arith.constant 0 : i32
    %c0_i32_1 = arith.constant 0 : i32
    return %c0_i32, %c0_i32_0 : i32, i32
  }
}

module attributes {stable_mosaic.version = 11 : i64} {
  func.func @kernel(%arg0: i32, %arg1: i32, %arg2: memref<1x4x128xf32, #tpu.memory_space<vmem>>, %arg3: memref<4x4xf32, #tpu.memory_space<vmem>>, %arg4: memref<4x1xf32, #tpu.memory_space<vmem>>, %arg5: memref<4x1xf32, #tpu.memory_space<vmem>>, %arg6: memref<4x1xf32, #tpu.memory_space<vmem>>, %arg7: memref<4x1xf32, #tpu.memory_space<vmem>>, %arg8: memref<32x4xf32, #tpu.memory_space<vmem>>, %arg9: memref<32x1xf32, #tpu.memory_space<vmem>>, %arg10: memref<32x1xf32, #tpu.memory_space<vmem>>, %arg11: memref<32x4xf32, #tpu.memory_space<vmem>>, %arg12: memref<1x32x4xf32, #tpu.memory_space<vmem>>, %arg13: memref<32x1xf32, #tpu.memory_space<vmem>>) attributes {dimension_semantics = [#tpu.dimension_semantics<parallel>, #tpu.dimension_semantics<arbitrary>], iteration_bounds = array<i64: 2, 2>, scalar_prefetch = 0 : i64, scratch_operands = 1 : i64, tpu.core_type = #tpu.core_type<tc>, window_params = [{transform_indices = @transform_0, window_bounds = array<i64: 1, 4, 128>}, {pipeline_mode = #tpu.pipeline_mode<synchronous>, transform_indices = @transform_1, window_bounds = array<i64: 4, 4>}, {pipeline_mode = #tpu.pipeline_mode<synchronous>, transform_indices = @transform_2, window_bounds = array<i64: 4, 1>}, {pipeline_mode = #tpu.pipeline_mode<synchronous>, transform_indices = @transform_3, window_bounds = array<i64: 4, 1>}, {pipeline_mode = #tpu.pipeline_mode<synchronous>, transform_indices = @transform_4, window_bounds = array<i64: 4, 1>}, {pipeline_mode = #tpu.pipeline_mode<synchronous>, transform_indices = @transform_5, window_bounds = array<i64: 4, 1>}, {pipeline_mode = #tpu.pipeline_mode<synchronous>, transform_indices = @transform_6, window_bounds = array<i64: 32, 4>}, {pipeline_mode = #tpu.pipeline_mode<synchronous>, transform_indices = @transform_7, window_bounds = array<i64: 32, 1>}, {pipeline_mode = #tpu.pipeline_mode<synchronous>, transform_indices = @transform_8, window_bounds = array<i64: 32, 1>}, {pipeline_mode = #tpu.pipeline_mode<synchronous>, transform_indices = @transform_9, window_bounds = array<i64: 32, 4>}, {transform_indices = @transform_10, window_bounds = array<i64: 1, 32, 4>}]} {
    %c0_i32 = arith.constant 0 : i32
    %0 = arith.cmpi eq, %arg1, %c0_i32 : i32
    %1 = arith.extui %0 : i1 to i32
    %c0_i32_0 = arith.constant 0 : i32
    %2 = arith.cmpi ne, %1, %c0_i32_0 : i32
    scf.if %2 {
      %cst_41 = arith.constant 0.000000e+00 : f32
      %68 = vector.broadcast %cst_41 : f32 to vector<1x32x4xf32>
      %c0_42 = arith.constant 0 : index
      %c0_43 = arith.constant 0 : index
      %c0_44 = arith.constant 0 : index
      %69 = vector.load %arg12[%c0_42, %c0_43, %c0_44] : memref<1x32x4xf32, #tpu.memory_space<vmem>>, vector<1x32x4xf32>
      tpu.vector_store %arg12[%c0_42, %c0_43, %c0_44], %68 {strides = array<i32>} : memref<1x32x4xf32, #tpu.memory_space<vmem>>, vector<1x32x4xf32>,
      %cst_45 = arith.constant 0.000000e+00 : f32
      %70 = vector.broadcast %cst_45 : f32 to vector<32x1xf32>
      %c0_46 = arith.constant 0 : index
      %c0_47 = arith.constant 0 : index
      %71 = vector.load %arg13[%c0_46, %c0_47] : memref<32x1xf32, #tpu.memory_space<vmem>>, vector<32x1xf32>
      tpu.vector_store %arg13[%c0_46, %c0_47], %70 {strides = array<i32>} : memref<32x1xf32, #tpu.memory_space<vmem>>, vector<32x1xf32>,
    } else {
    }
    %c0 = arith.constant 0 : index
    %c0_1 = arith.constant 0 : index
    %3 = vector.load %arg4[%c0, %c0_1] : memref<4x1xf32, #tpu.memory_space<vmem>>, vector<4x1xf32>
    %cst = arith.constant 0.001953125 : f32
    %4 = vector.broadcast %cst : f32 to vector<4x1xf32>
    %5 = arith.mulf %3, %4 : vector<4x1xf32>
    %c0_2 = arith.constant 0 : index
    %c0_3 = arith.constant 0 : index
    %6 = vector.load %arg5[%c0_2, %c0_3] : memref<4x1xf32, #tpu.memory_space<vmem>>, vector<4x1xf32>
    %cst_4 = arith.constant 0.001953125 : f32
    %7 = vector.broadcast %cst_4 : f32 to vector<4x1xf32>
    %8 = arith.mulf %6, %7 : vector<4x1xf32>
    %9 = arith.mulf %5, %5 : vector<4x1xf32>
    %10 = arith.subf %8, %9 : vector<4x1xf32>
    %cst_5 = arith.constant 0.000000e+00 : f32
    %11 = vector.broadcast %cst_5 : f32 to vector<4x1xf32>
    %12 = arith.maximumf %10, %11 : vector<4x1xf32>
    %cst_6 = arith.constant 9.99999974E-6 : f32
    %13 = vector.broadcast %cst_6 : f32 to vector<4x1xf32>
    %14 = arith.addf %12, %13 : vector<4x1xf32>
    %15 = math.rsqrt %14 : vector<4x1xf32>
    %c0_7 = arith.constant 0 : index
    %c0_8 = arith.constant 0 : index
    %16 = vector.load %arg6[%c0_7, %c0_8] : memref<4x1xf32, #tpu.memory_space<vmem>>, vector<4x1xf32>
    %17 = arith.mulf %15, %16 : vector<4x1xf32>
    %c0_9 = arith.constant 0 : index
    %c0_10 = arith.constant 0 : index
    %18 = vector.load %arg3[%c0_9, %c0_10] : memref<4x4xf32, #tpu.memory_space<vmem>>, vector<4x4xf32>
    %c0_11 = arith.constant 0 : index
    %c0_12 = arith.constant 0 : index
    %c0_13 = arith.constant 0 : index
    %19 = vector.load %arg2[%c0_11, %c0_12, %c0_13] : memref<1x4x128xf32, #tpu.memory_space<vmem>>, vector<1x4x128xf32>
    %20 = vector.shape_cast %19 : vector<1x4x128xf32> to vector<4x128xf32>
    %cst_14 = arith.constant dense<0.000000e+00> : vector<4x128xf32>
    %21 = tpu.matmul %18, %20, %cst_14 {dimension_numbers = #tpu.dot_dimension_numbers<[1], [0], [0], [1], [0, 0, 1, 1], [], []>} : vector<4x4xf32>, vector<4x128xf32>, vector<4x128xf32> -> vector<4x128xf32>
    %22 = vector.broadcast %5 : vector<4x1xf32> to vector<4x128xf32>
    %23 = arith.subf %21, %22 : vector<4x128xf32>
    %24 = vector.broadcast %17 : vector<4x1xf32> to vector<4x128xf32>
    %25 = arith.mulf %23, %24 : vector<4x128xf32>
    %c0_15 = arith.constant 0 : index
    %c0_16 = arith.constant 0 : index
    %26 = vector.load %arg7[%c0_15, %c0_16] : memref<4x1xf32, #tpu.memory_space<vmem>>, vector<4x1xf32>
    %27 = vector.broadcast %26 : vector<4x1xf32> to vector<4x128xf32>
    %28 = arith.addf %25, %27 : vector<4x128xf32>
    %cst_17 = arith.constant 0.000000e+00 : f32
    %29 = vector.broadcast %cst_17 : f32 to vector<4x128xf32>
    %30 = arith.maximumf %28, %29 : vector<4x128xf32>
    %31 = arith.mulf %30, %30 : vector<4x128xf32>
    %cst_18 = arith.constant dense<0.000000e+00> : vector<128xf32>
    %32 = vector.multi_reduction <add>, %31, %cst_18 [0] : vector<4x128xf32> to vector<128xf32>
    %33 = vector.shape_cast %32 : vector<128xf32> to vector<1x128xf32>
    %c0_19 = arith.constant 0 : index
    %c0_20 = arith.constant 0 : index
    %34 = vector.load %arg8[%c0_19, %c0_20] : memref<32x4xf32, #tpu.memory_space<vmem>>, vector<32x4xf32>
    %cst_21 = arith.constant dense<0.000000e+00> : vector<32x128xf32>
    %35 = tpu.matmul %34, %30, %cst_21 {dimension_numbers = #tpu.dot_dimension_numbers<[1], [0], [0], [1], [0, 0, 1, 1], [], []>} : vector<32x4xf32>, vector<4x128xf32>, vector<32x128xf32> -> vector<32x128xf32>
    %c0_22 = arith.constant 0 : index
    %c0_23 = arith.constant 0 : index
    %36 = vector.load %arg9[%c0_22, %c0_23] : memref<32x1xf32, #tpu.memory_space<vmem>>, vector<32x1xf32>
    %37 = vector.broadcast %36 : vector<32x1xf32> to vector<32x128xf32>
    %38 = vector.broadcast %33 : vector<1x128xf32> to vector<32x128xf32>
    %39 = arith.mulf %37, %38 : vector<32x128xf32>
    %40 = arith.addf %39, %35 : vector<32x128xf32>
    %c0_24 = arith.constant 0 : index
    %c0_25 = arith.constant 0 : index
    %41 = vector.load %arg10[%c0_24, %c0_25] : memref<32x1xf32, #tpu.memory_space<vmem>>, vector<32x1xf32>
    %42 = vector.broadcast %41 : vector<32x1xf32> to vector<32x128xf32>
    %43 = arith.addf %40, %42 : vector<32x128xf32>
    %cst_26 = arith.constant dense<0xFF800000> : vector<128xf32>
    %44 = vector.multi_reduction <maximumf>, %43, %cst_26 [0] : vector<32x128xf32> to vector<128xf32>
    %45 = vector.shape_cast %44 : vector<128xf32> to vector<1x128xf32>
    %46 = vector.broadcast %45 : vector<1x128xf32> to vector<32x128xf32>
    %47 = arith.subf %43, %46 : vector<32x128xf32>
    %48 = math.exp %47 : vector<32x128xf32>
    %cst_27 = arith.constant dense<0.000000e+00> : vector<128xf32>
    %49 = vector.multi_reduction <add>, %48, %cst_27 [0] : vector<32x128xf32> to vector<128xf32>
    %50 = vector.shape_cast %49 : vector<128xf32> to vector<1x128xf32>
    %51 = vector.broadcast %50 : vector<1x128xf32> to vector<32x128xf32>
    %52 = arith.divf %48, %51 : vector<32x128xf32>
    %c0_28 = arith.constant 0 : index
    %c0_29 = arith.constant 0 : index
    %c0_30 = arith.constant 0 : index
    %53 = vector.load %arg12[%c0_28, %c0_29, %c0_30] : memref<1x32x4xf32, #tpu.memory_space<vmem>>, vector<1x32x4xf32>
    %54 = vector.shape_cast %53 : vector<1x32x4xf32> to vector<32x4xf32>
    %cst_31 = arith.constant dense<0.000000e+00> : vector<32x4xf32>
    %55 = tpu.matmul %52, %30, %cst_31 {dimension_numbers = #tpu.dot_dimension_numbers<[1], [1], [0], [0], [0, 0, 1, 0], [], []>} : vector<32x128xf32>, vector<4x128xf32>, vector<32x4xf32> -> vector<32x4xf32>
    %56 = arith.addf %54, %55 : vector<32x4xf32>
    %c0_32 = arith.constant 0 : index
    %c0_33 = arith.constant 0 : index
    %c0_34 = arith.constant 0 : index
    %57 = vector.load %arg12[%c0_32, %c0_33, %c0_34] : memref<1x32x4xf32, #tpu.memory_space<vmem>>, vector<1x32x4xf32>
    %58 = vector.shape_cast %57 : vector<1x32x4xf32> to vector<32x4xf32>
    %59 = vector.shape_cast %56 : vector<32x4xf32> to vector<1x32x4xf32>
    tpu.vector_store %arg12[%c0_32, %c0_33, %c0_34], %59 {strides = array<i32>} : memref<1x32x4xf32, #tpu.memory_space<vmem>>, vector<1x32x4xf32>,
    %c0_35 = arith.constant 0 : index
    %c0_36 = arith.constant 0 : index
    %60 = vector.load %arg13[%c0_35, %c0_36] : memref<32x1xf32, #tpu.memory_space<vmem>>, vector<32x1xf32>
    %cst_37 = arith.constant dense<0.000000e+00> : vector<32xf32>
    %61 = vector.multi_reduction <add>, %52, %cst_37 [1] : vector<32x128xf32> to vector<32xf32>
    %62 = vector.shape_cast %61 : vector<32xf32> to vector<32x1xf32>
    %63 = arith.addf %60, %62 : vector<32x1xf32>
    %c0_38 = arith.constant 0 : index
    %c0_39 = arith.constant 0 : index
    %64 = vector.load %arg13[%c0_38, %c0_39] : memref<32x1xf32, #tpu.memory_space<vmem>>, vector<32x1xf32>
    tpu.vector_store %arg13[%c0_38, %c0_39], %63 {strides = array<i32>} : memref<32x1xf32, #tpu.memory_space<vmem>>, vector<32x1xf32>,
    %c1_i32 = arith.constant 1 : i32
    %65 = arith.cmpi eq, %arg1, %c1_i32 : i32
    %66 = arith.extui %65 : i1 to i32
    %c0_i32_40 = arith.constant 0 : i32
    %67 = arith.cmpi ne, %66, %c0_i32_40 : i32
    scf.if %67 {
      %c0_41 = arith.constant 0 : index
      %c0_42 = arith.constant 0 : index
      %c0_43 = arith.constant 0 : index
      %68 = vector.load %arg12[%c0_41, %c0_42, %c0_43] : memref<1x32x4xf32, #tpu.memory_space<vmem>>, vector<1x32x4xf32>
      %69 = vector.shape_cast %68 : vector<1x32x4xf32> to vector<32x4xf32>
      %c0_44 = arith.constant 0 : index
      %c0_45 = arith.constant 0 : index
      %70 = vector.load %arg13[%c0_44, %c0_45] : memref<32x1xf32, #tpu.memory_space<vmem>>, vector<32x1xf32>
      %c0_46 = arith.constant 0 : index
      %c0_47 = arith.constant 0 : index
      %71 = vector.load %arg11[%c0_46, %c0_47] : memref<32x4xf32, #tpu.memory_space<vmem>>, vector<32x4xf32>
      %72 = vector.broadcast %70 : vector<32x1xf32> to vector<32x4xf32>
      %73 = arith.mulf %72, %71 : vector<32x4xf32>
      %74 = arith.subf %69, %73 : vector<32x4xf32>
      %c0_48 = arith.constant 0 : index
      %c0_49 = arith.constant 0 : index
      %c0_50 = arith.constant 0 : index
      %75 = vector.load %arg12[%c0_48, %c0_49, %c0_50] : memref<1x32x4xf32, #tpu.memory_space<vmem>>, vector<1x32x4xf32>
      %76 = vector.shape_cast %75 : vector<1x32x4xf32> to vector<32x4xf32>
      %77 = vector.shape_cast %74 : vector<32x4xf32> to vector<1x32x4xf32>
      tpu.vector_store %arg12[%c0_48, %c0_49, %c0_50], %77 {strides = array<i32>} : memref<1x32x4xf32, #tpu.memory_space<vmem>>, vector<1x32x4xf32>,
    } else {
    }
    return
  }
  func.func @transform_0(%arg0: i32, %arg1: i32) -> (i32, i32, i32) {
    %c0_i32 = arith.constant 0 : i32
    %c0_i32_0 = arith.constant 0 : i32
    return %arg0, %c0_i32, %arg1 : i32, i32, i32
  }
  func.func @transform_1(%arg0: i32, %arg1: i32) -> (i32, i32) {
    %c0_i32 = arith.constant 0 : i32
    %c0_i32_0 = arith.constant 0 : i32
    %c0_i32_1 = arith.constant 0 : i32
    return %c0_i32, %c0_i32_0 : i32, i32
  }
  func.func @transform_2(%arg0: i32, %arg1: i32) -> (i32, i32) {
    %c0_i32 = arith.constant 0 : i32
    %c0_i32_0 = arith.constant 0 : i32
    %c0_i32_1 = arith.constant 0 : i32
    return %c0_i32, %c0_i32_0 : i32, i32
  }
  func.func @transform_3(%arg0: i32, %arg1: i32) -> (i32, i32) {
    %c0_i32 = arith.constant 0 : i32
    %c0_i32_0 = arith.constant 0 : i32
    %c0_i32_1 = arith.constant 0 : i32
    return %c0_i32, %c0_i32_0 : i32, i32
  }
  func.func @transform_4(%arg0: i32, %arg1: i32) -> (i32, i32) {
    %c0_i32 = arith.constant 0 : i32
    %c0_i32_0 = arith.constant 0 : i32
    %c0_i32_1 = arith.constant 0 : i32
    return %c0_i32, %c0_i32_0 : i32, i32
  }
  func.func @transform_5(%arg0: i32, %arg1: i32) -> (i32, i32) {
    %c0_i32 = arith.constant 0 : i32
    %c0_i32_0 = arith.constant 0 : i32
    %c0_i32_1 = arith.constant 0 : i32
    return %c0_i32, %c0_i32_0 : i32, i32
  }
  func.func @transform_6(%arg0: i32, %arg1: i32) -> (i32, i32) {
    %c0_i32 = arith.constant 0 : i32
    %c0_i32_0 = arith.constant 0 : i32
    %c0_i32_1 = arith.constant 0 : i32
    return %c0_i32, %c0_i32_0 : i32, i32
  }
  func.func @transform_7(%arg0: i32, %arg1: i32) -> (i32, i32) {
    %c0_i32 = arith.constant 0 : i32
    %c0_i32_0 = arith.constant 0 : i32
    %c0_i32_1 = arith.constant 0 : i32
    return %c0_i32, %c0_i32_0 : i32, i32
  }
  func.func @transform_8(%arg0: i32, %arg1: i32) -> (i32, i32) {
    %c0_i32 = arith.constant 0 : i32
    %c0_i32_0 = arith.constant 0 : i32
    %c0_i32_1 = arith.constant 0 : i32
    return %c0_i32, %c0_i32_0 : i32, i32
  }
  func.func @transform_9(%arg0: i32, %arg1: i32) -> (i32, i32) {
    %c0_i32 = arith.constant 0 : i32
    %c0_i32_0 = arith.constant 0 : i32
    %c0_i32_1 = arith.constant 0 : i32
    return %c0_i32, %c0_i32_0 : i32, i32
  }
  func.func @transform_10(%arg0: i32, %arg1: i32) -> (i32, i32, i32) {
    %c0_i32 = arith.constant 0 : i32
    %c0_i32_0 = arith.constant 0 : i32
    %c0_i32_1 = arith.constant 0 : i32
    return %arg0, %c0_i32, %c0_i32_0 : i32, i32, i32
  }
}

module attributes {stable_mosaic.version = 11 : i64} {
  func.func @kernel(%arg0: memref<2x32x4xf32, #tpu.memory_space<vmem>>, %arg1: memref<32x1xf32, #tpu.memory_space<vmem>>, %arg2: memref<32x1xf32, #tpu.memory_space<vmem>>, %arg3: memref<4x4xf32, #tpu.memory_space<vmem>>, %arg4: memref<1x4xf32, #tpu.memory_space<vmem>>, %arg5: memref<5x4xf32, #tpu.memory_space<vmem>>, %arg6: memref<1x5xf32, #tpu.memory_space<vmem>>, %arg7: memref<2x4xf32, #tpu.memory_space<vmem>>, %arg8: memref<2x5xf32, #tpu.memory_space<vmem>>) attributes {dimension_semantics = [], scalar_prefetch = 0 : i64, scratch_operands = 0 : i64, tpu.core_type = #tpu.core_type<tc>} {
    %c0 = arith.constant 0 : index
    %c0_0 = arith.constant 0 : index
    %c0_1 = arith.constant 0 : index
    %0 = vector.load %arg0[%c0, %c0_0, %c0_1] : memref<2x32x4xf32, #tpu.memory_space<vmem>>, vector<2x32x4xf32>
    %cst = arith.constant dense<0.000000e+00> : vector<2x32xf32>
    %1 = vector.multi_reduction <add>, %0, %cst [2] : vector<2x32x4xf32> to vector<2x32xf32>
    %2 = vector.shape_cast %1 : vector<2x32xf32> to vector<2x32x1xf32>
    %cst_2 = arith.constant dense<0.000000e+00> : vector<32x1xf32>
    %3 = vector.multi_reduction <add>, %2, %cst_2 [0] : vector<2x32x1xf32> to vector<32x1xf32>
    %4 = vector.shape_cast %3 : vector<32x1xf32> to vector<1x32x1xf32>
    %cst_3 = arith.constant 1.250000e-01 : f32
    %5 = vector.broadcast %cst_3 : f32 to vector<1x32x1xf32>
    %6 = arith.mulf %4, %5 : vector<1x32x1xf32>
    %7 = vector.broadcast %6 : vector<1x32x1xf32> to vector<2x32x4xf32>
    %8 = arith.subf %0, %7 : vector<2x32x4xf32>
    %9 = arith.mulf %8, %8 : vector<2x32x4xf32>
    %cst_4 = arith.constant dense<0.000000e+00> : vector<2x32xf32>
    %10 = vector.multi_reduction <add>, %9, %cst_4 [2] : vector<2x32x4xf32> to vector<2x32xf32>
    %11 = vector.shape_cast %10 : vector<2x32xf32> to vector<2x32x1xf32>
    %cst_5 = arith.constant dense<0.000000e+00> : vector<32x1xf32>
    %12 = vector.multi_reduction <add>, %11, %cst_5 [0] : vector<2x32x1xf32> to vector<32x1xf32>
    %13 = vector.shape_cast %12 : vector<32x1xf32> to vector<1x32x1xf32>
    %cst_6 = arith.constant 1.250000e-01 : f32
    %14 = vector.broadcast %cst_6 : f32 to vector<1x32x1xf32>
    %15 = arith.mulf %13, %14 : vector<1x32x1xf32>
    %cst_7 = arith.constant 9.99999974E-6 : f32
    %16 = vector.broadcast %cst_7 : f32 to vector<1x32x1xf32>
    %17 = arith.addf %15, %16 : vector<1x32x1xf32>
    %18 = math.rsqrt %17 : vector<1x32x1xf32>
    %19 = vector.broadcast %18 : vector<1x32x1xf32> to vector<2x32x4xf32>
    %20 = arith.mulf %8, %19 : vector<2x32x4xf32>
    %c0_8 = arith.constant 0 : index
    %c0_9 = arith.constant 0 : index
    %21 = vector.load %arg1[%c0_8, %c0_9] : memref<32x1xf32, #tpu.memory_space<vmem>>, vector<32x1xf32>
    %22 = vector.shape_cast %21 : vector<32x1xf32> to vector<1x32x1xf32>
    %23 = vector.broadcast %22 : vector<1x32x1xf32> to vector<2x32x4xf32>
    %24 = arith.mulf %20, %23 : vector<2x32x4xf32>
    %c0_10 = arith.constant 0 : index
    %c0_11 = arith.constant 0 : index
    %25 = vector.load %arg2[%c0_10, %c0_11] : memref<32x1xf32, #tpu.memory_space<vmem>>, vector<32x1xf32>
    %26 = vector.shape_cast %25 : vector<32x1xf32> to vector<1x32x1xf32>
    %27 = vector.broadcast %26 : vector<1x32x1xf32> to vector<2x32x4xf32>
    %28 = arith.addf %24, %27 : vector<2x32x4xf32>
    %cst_12 = arith.constant 0.000000e+00 : f32
    %29 = vector.broadcast %cst_12 : f32 to vector<2x32x4xf32>
    %30 = arith.maximumf %28, %29 : vector<2x32x4xf32>
    %cst_13 = arith.constant dense<0.000000e+00> : vector<2x4xf32>
    %31 = vector.multi_reduction <add>, %30, %cst_13 [1] : vector<2x32x4xf32> to vector<2x4xf32>
    %cst_14 = arith.constant 3.125000e-02 : f32
    %32 = vector.broadcast %cst_14 : f32 to vector<2x4xf32>
    %33 = arith.mulf %31, %32 : vector<2x4xf32>
    %c0_15 = arith.constant 0 : index
    %c0_16 = arith.constant 0 : index
    %34 = vector.load %arg3[%c0_15, %c0_16] : memref<4x4xf32, #tpu.memory_space<vmem>>, vector<4x4xf32>
    %cst_17 = arith.constant dense<0.000000e+00> : vector<2x4xf32>
    %35 = tpu.matmul %33, %34, %cst_17 {dimension_numbers = #tpu.dot_dimension_numbers<[1], [1], [0], [0], [0, 0, 1, 0], [], []>} : vector<2x4xf32>, vector<4x4xf32>, vector<2x4xf32> -> vector<2x4xf32>
    %c0_18 = arith.constant 0 : index
    %c0_19 = arith.constant 0 : index
    %36 = vector.load %arg4[%c0_18, %c0_19] : memref<1x4xf32, #tpu.memory_space<vmem>>, vector<1x4xf32>
    %37 = vector.broadcast %36 : vector<1x4xf32> to vector<2x4xf32>
    %38 = arith.addf %35, %37 : vector<2x4xf32>
    %39 = arith.negf %38 : vector<2x4xf32>
    %40 = math.exp %39 : vector<2x4xf32>
    %cst_20 = arith.constant 1.000000e+00 : f32
    %41 = vector.broadcast %cst_20 : f32 to vector<2x4xf32>
    %42 = arith.addf %41, %40 : vector<2x4xf32>
    %43 = arith.divf %41, %42 : vector<2x4xf32>
    %cst_21 = arith.constant 1.000000e+00 : f32
    %44 = vector.broadcast %cst_21 : f32 to vector<2x4xf32>
    %45 = arith.addf %44, %43 : vector<2x4xf32>
    %c0_22 = arith.constant 0 : index
    %c0_23 = arith.constant 0 : index
    %46 = vector.load %arg7[%c0_22, %c0_23] : memref<2x4xf32, #tpu.memory_space<vmem>>, vector<2x4xf32>
    tpu.vector_store %arg7[%c0_22, %c0_23], %45 {strides = array<i32>} : memref<2x4xf32, #tpu.memory_space<vmem>>, vector<2x4xf32>,
    %c0_24 = arith.constant 0 : index
    %c0_25 = arith.constant 0 : index
    %47 = vector.load %arg5[%c0_24, %c0_25] : memref<5x4xf32, #tpu.memory_space<vmem>>, vector<5x4xf32>
    %cst_26 = arith.constant dense<0.000000e+00> : vector<2x5xf32>
    %48 = tpu.matmul %33, %47, %cst_26 {dimension_numbers = #tpu.dot_dimension_numbers<[1], [1], [0], [0], [0, 0, 1, 0], [], []>} : vector<2x4xf32>, vector<5x4xf32>, vector<2x5xf32> -> vector<2x5xf32>
    %c0_27 = arith.constant 0 : index
    %c0_28 = arith.constant 0 : index
    %49 = vector.load %arg6[%c0_27, %c0_28] : memref<1x5xf32, #tpu.memory_space<vmem>>, vector<1x5xf32>
    %50 = vector.broadcast %49 : vector<1x5xf32> to vector<2x5xf32>
    %51 = arith.addf %48, %50 : vector<2x5xf32>
    %c0_29 = arith.constant 0 : index
    %c0_30 = arith.constant 0 : index
    %52 = vector.load %arg8[%c0_29, %c0_30] : memref<2x5xf32, #tpu.memory_space<vmem>>, vector<2x5xf32>
    tpu.vector_store %arg8[%c0_29, %c0_30], %51 {strides = array<i32>} : memref<2x5xf32, #tpu.memory_space<vmem>>, vector<2x5xf32>,
    return
  }
}

module attributes {stable_mosaic.version = 11 : i64} {
  func.func @_apply_kernel(%arg0: i32, %arg1: i32, %arg2: memref<1x4x128xf32, #tpu.memory_space<vmem>>, %arg3: memref<1x4x1xf32, #tpu.memory_space<vmem>>, %arg4: memref<1x4x128xf32, #tpu.memory_space<vmem>>) attributes {dimension_semantics = [#tpu.dimension_semantics<parallel>, #tpu.dimension_semantics<parallel>], iteration_bounds = array<i64: 2, 2>, scalar_prefetch = 0 : i64, scratch_operands = 0 : i64, tpu.core_type = #tpu.core_type<tc>, window_params = [{transform_indices = @transform_0, window_bounds = array<i64: 1, 4, 128>}, {transform_indices = @transform_1, window_bounds = array<i64: 1, 4, 1>}, {transform_indices = @transform_2, window_bounds = array<i64: 1, 4, 128>}]} {
    %c0 = arith.constant 0 : index
    %c0_0 = arith.constant 0 : index
    %c0_1 = arith.constant 0 : index
    %0 = vector.load %arg3[%c0, %c0_0, %c0_1] : memref<1x4x1xf32, #tpu.memory_space<vmem>>, vector<1x4x1xf32>
    %1 = vector.shape_cast %0 : vector<1x4x1xf32> to vector<4x1xf32>
    %c0_2 = arith.constant 0 : index
    %c0_3 = arith.constant 0 : index
    %c0_4 = arith.constant 0 : index
    %2 = vector.load %arg2[%c0_2, %c0_3, %c0_4] : memref<1x4x128xf32, #tpu.memory_space<vmem>>, vector<1x4x128xf32>
    %3 = vector.shape_cast %2 : vector<1x4x128xf32> to vector<4x128xf32>
    %4 = vector.broadcast %1 : vector<4x1xf32> to vector<4x128xf32>
    %5 = arith.mulf %4, %3 : vector<4x128xf32>
    %cst = arith.constant 0.000000e+00 : f32
    %6 = vector.broadcast %cst : f32 to vector<4x128xf32>
    %7 = arith.maximumf %5, %6 : vector<4x128xf32>
    %c0_5 = arith.constant 0 : index
    %c0_6 = arith.constant 0 : index
    %c0_7 = arith.constant 0 : index
    %8 = vector.load %arg4[%c0_5, %c0_6, %c0_7] : memref<1x4x128xf32, #tpu.memory_space<vmem>>, vector<1x4x128xf32>
    %9 = vector.shape_cast %8 : vector<1x4x128xf32> to vector<4x128xf32>
    %10 = vector.shape_cast %7 : vector<4x128xf32> to vector<1x4x128xf32>
    tpu.vector_store %arg4[%c0_5, %c0_6, %c0_7], %10 {strides = array<i32>} : memref<1x4x128xf32, #tpu.memory_space<vmem>>, vector<1x4x128xf32>,
    return
  }
  func.func @transform_0(%arg0: i32, %arg1: i32) -> (i32, i32, i32) {
    %c0_i32 = arith.constant 0 : i32
    %c0_i32_0 = arith.constant 0 : i32
    return %arg0, %c0_i32, %arg1 : i32, i32, i32
  }
  func.func @transform_1(%arg0: i32, %arg1: i32) -> (i32, i32, i32) {
    %c0_i32 = arith.constant 0 : i32
    %c0_i32_0 = arith.constant 0 : i32
    %c0_i32_1 = arith.constant 0 : i32
    return %arg0, %c0_i32, %c0_i32_0 : i32, i32, i32
  }
  func.func @transform_2(%arg0: i32, %arg1: i32) -> (i32, i32, i32) {
    %c0_i32 = arith.constant 0 : i32
    %c0_i32_0 = arith.constant 0 : i32
    return %arg0, %c0_i32, %arg1 : i32, i32, i32
  }
}

</mosaic_0001>

<bundles_post_ra>
// kernel: _lambda_.7
= control target key start
LH: loop header
LB: loop body
LE: loop exit
PB: predicated region body
PF: predicated region fallthrough
CT: control target
= control target key end

     0   :  { %s410_s9 = smov 0   ;;  %s412_s10 = smov 0   ;;  %s461_s0 = inlined_call_operand.vmem [shape: f32[2,4,256], index: 0, kind: input, shape index: {}]   ;;  %s462_s1 = inlined_call_operand.vmem [shape: f32[2,4,1], index: 1, kind: input, shape index: {}]   ;;  %s463_s2 = inlined_call_operand.vmem [shape: f32[2,4,256], index: 2, kind: output, shape index: {}]  }
   0x1   :  { %s414_s11 = smov 0   ;;  %s416_s12 = smov 0  }
   0x2   :  { %s418_s13 = smov 0  }
   0x3 LB: > { %s21_s14 = sadd.s32 1, %s384_s11  ;;  %s24_s15 = sadd.s32 1, %s388_s12  ;;  %s392_s13 = sphi %s418_s13, %s12_s13   ;;  %s388_s12 = sphi %s416_s12, %s467_s12   ;;  %s384_s11 = sphi %s414_s11, %s466_s11   ;;  %s380_s10 = sphi %s412_s10, %s465_s10   ;;  %s376_s9 = sphi %s410_s9, %s464_s9  }
   0x4   : > { %p22_p0 = scmp.ge.s32.totalorder %s21_s14, 2  ;;  %p304_p1 = scmp.ge.s32.totalorder %s392_s13, 1 }
   0x5   : > { %p140_p2 = scmp.lt.s32.totalorder %s392_s13, 5 }
   0x6   : > { %s469_s14 = smov (%p22_p0, %s21_s14), 0  ;;  %s471_s15 = smov (!%p22_p0, %s24_s15), %s388_s12 }
   0x7   : > { %p141_p3 = pnand %p304_p1, %p140_p2  ;;  %p26_p4 = scmp.ge.s32.totalorder %s471_s15, 2 }
   0x8   : > { %p172_p5 = scmp.lt.s32.totalorder (!%p141_p3), %s380_s10, 1  ;;  %p174_p6 = scmp.lt.s32.totalorder (!%p141_p3), %s376_s9, 1 }
   0x9   : > { %s473_s15 = smov (%p26_p4, %s471_s15), 0  ;;  %144 = sbr.rel (%p141_p3) target bundleno = 138 (0x8a), region = 28 }
   0xe   : > { %v394_v0 = vmov 0   ;;  %s475_s10 = smov (!%p172_p5, %s380_s10), 1  ;;  %s477_s9 = smov (!%p174_p6, %s376_s9), 1 }
   0xf   : > { %353 = vset.pattern.permute.xlu0 %v394_v0  ;;  %s307_s16 = sshll.u32 %s475_s10, 2  ;;  %s305_s20 = sshll.u32 %s475_s10, 1 }
  0x10   : > { %s183_s19 = scalar_lea.vmem %s462_s1, %s307_s16  ;;  %s177_s21 = sadd.s32 %s305_s20, %s477_s9 }
  0x11   : > { %v192_v1 = vld [vmem:[%s183_s19] sm:$0xf]  ;;  %s306_s22 = sshll.u32 %s177_s21, 2 }
  0x12   : > { %196 = vperm.xlu0 %353, %v192_v1   ;;  %s179_s25 = scalar_lea.vmem %s461_s0, %s306_s22  ;;  %s191_s28 = scalar_lea.vmem %s463_s2, %s306_s22 }
  0x13   : > { %v193_v2 = vld [vmem:[%s179_s25] sm:$0xf] }
  0x84   : > { %v197_v3 = vpop.permute.xlu0 %196 }
  0x85   : > { %v199_v4 = vmul.f32 %v197_v3, %v193_v2 }
  0x87   : > { %v200_v5 = vmax.f32 %v199_v4, 0.0 }
  0x89   : > { %201 = vst [vmem:[%s191_s28] sm:$0xf] %v200_v5 }
  0x8a PF: > { %s12_s13 = sadd.s32 1, %s392_s13   ;;  %s464_s9 = smov %s384_s11 }
  0x8b   : > { %p9_p7 = scmp.ge.s32.totalorder %s12_s13, 6   ;;  %s465_s10 = smov %s388_s12 }
  0x8c   : > { %s466_s11 = smov %s469_s14  ;;  %s467_s12 = smov %s473_s15 }
  0x8d   :  { %11 = sbr.rel (!%p9_p7) target bundleno = 3 (0x3), region = 61 }

// kernel: _lambda_.4
= control target key start
LH: loop header
LB: loop body
LE: loop exit
PB: predicated region body
PF: predicated region fallthrough
CT: control target
= control target key end

     0   :  { %s393_s12 = smov 0   ;;  %s395_s13 = smov 0   ;;  %s462_s0 = inlined_call_operand.vmem [shape: f32[2,4,256], index: 0, kind: input, shape index: {}]   ;;  %s463_s1 = inlined_call_operand.vmem [shape: f32[4,4], index: 1, kind: input, shape index: {}]   ;;  %s464_s2 = inlined_call_operand.vmem [shape: f32[4,1], index: 2, kind: output, shape index: {0}]   ;;  %s465_s3 = inlined_call_operand.vmem [shape: f32[4,1], index: 3, kind: output, shape index: {1}]  }
   0x1   :  { %s397_s14 = smov 0   ;;  %s399_s15 = smov 0  }
   0x2   :  { %s401_s16 = smov 0  }
   0x3 LB: > { %s23_s17 = sadd.s32 1, %s362_s14  ;;  %s26_s18 = sadd.s32 1, %s366_s15  ;;  %s370_s16 = sphi %s401_s16, %s14_s16   ;;  %s366_s15 = sphi %s399_s15, %s469_s15   ;;  %s362_s14 = sphi %s397_s14, %s468_s14   ;;  %s358_s13 = sphi %s395_s13, %s467_s13   ;;  %s354_s12 = sphi %s393_s12, %s466_s12  }
   0x4   : > { %p24_p0 = scmp.ge.s32.totalorder %s23_s17, 2  ;;  %p284_p1 = scmp.ge.s32.totalorder %s370_s16, 1 }
   0x5   : > { %p147_p2 = scmp.lt.s32.totalorder %s370_s16, 5 }
   0x6   : > { %s471_s17 = smov (%p24_p0, %s23_s17), 0  ;;  %s473_s18 = smov (!%p24_p0, %s26_s18), %s366_s15 }
   0x7   : > { %p148_p3 = pnand %p284_p1, %p147_p2  ;;  %p28_p4 = scmp.ge.s32.totalorder %s473_s18, 2 }
   0x8   : > { %p169_p5 = scmp.lt.s32.totalorder (!%p148_p3), %s358_s13, 1  ;;  %p171_p6 = scmp.lt.s32.totalorder (!%p148_p3), %s354_s12, 1 }
   0x9   : > { %s475_s18 = smov (%p28_p4, %s473_s18), 0  ;;  %151 = sbr.rel (%p148_p3) target bundleno = 279 (0x117), region = 28 }
   0xa   : > { %p177_p7 = scmp.eq.s32.totalorder (!%p148_p3), %s358_s13, 0  ;;  %p178_p8 = scmp.eq.s32.totalorder (!%p148_p3), %s354_s12, 0 }
   0xc   : > { %p179_p9 = pnand (!%p148_p3), %p178_p8, %p177_p7 }
   0xe   : > { %s477_s13 = smov (!%p169_p5, %s358_s13), 1  ;;  %s479_s12 = smov (!%p171_p6, %s354_s12), 1 }
   0xf   : > { %s285_s19 = sshll.u32 %s477_s13, 1  ;;  %182 = sbr.rel (%p179_p9) target bundleno = 23 (0x17), region = 32 }
  0x10   : > { %s174_s20 = sadd.s32 %s285_s19, %s479_s12 }
  0x11   : > { %s286_s21 = sshll.u32 %s174_s20, 2 }
  0x12   : > { %s176_s24 = scalar_lea.vmem %s462_s0, %s286_s21 }
  0x14   : > { %vm183_vm0 = vcmask 3072   ;;  %v372_v0 = vmov 0.0  }
  0x15   : > { %184 = vst.msk [vmem:[%s464_s2] sm:$0xf] %vm183_vm0, %v372_v0 }
  0x16   : > { %185 = vst.msk [vmem:[%s465_s3] sm:$0xf] %vm183_vm0, %v372_v0 }
  0x17 PF: > { %v187_v1 = vld [vmem:[%s176_s24] sm:$0xf]  ;;  %vm192_vm1 = vcmask 1043456   ;;  %vm188_vm2 = vcmask 31744   ;;  %vm221_vm3 = vcmask 3072  }
  0x18   : > { %v186_v2 = vld [vmem:[%s463_s1] sm:$0xf]  ;;  %287 = vmatpush.msk.msra.mxu0 %vm192_vm1, %v187_v1 }
  0x19   : > { %288 = vmatmul.msk.f32.vlgmr.msra.gmra.mxu0 %vm188_vm2, %v186_v2 }
  0x1c   : > { %v216_v7 = vld [vmem:[%s464_s2] sm:$0xf] }
  0x1d   : > { %v223_v10 = vld [vmem:[%s465_s3] sm:$0xf] }
  0x96   : > { %v213_v3 = vpop.f32.mrf.mxu0 }
  0x97   : > { %v217_v4 = vsel %vm192_vm1, %v213_v3, 0.0  ;;  %v224_v5 = vmul.f32 %v213_v3, %v213_v3 }
  0x98   : > { %218 = vadd.xlane.f32.xlu0 %v217_v4 }
  0x99   : > { %v225_v6 = vsel %vm192_vm1, %v224_v5, 0.0 }
  0xa0   : > { %226 = vadd.xlane.f32.xlu0 %v225_v6 }
 0x10b   : > { %v219_v8 = vpop.xlane.xlu0 %218 }
 0x10c   : > { %v220_v9 = vadd.f32 %v219_v8, %v216_v7 }
 0x10e   : > { %222 = vst.msk [vmem:[%s464_s2] sm:$0xf] %vm221_vm3, %v220_v9 }
 0x113   : > { %v227_v11 = vpop.xlane.xlu0 %226 }
 0x114   : > { %v228_v12 = vadd.f32 %v227_v11, %v223_v10 }
 0x116   : > { %229 = vst.msk [vmem:[%s465_s3] sm:$0xf] %vm221_vm3, %v228_v12 }
 0x117 PF: > { %s14_s16 = sadd.s32 1, %s370_s16   ;;  %s466_s12 = smov %s362_s14 }
 0x118   : > { %p11_p10 = scmp.ge.s32.totalorder %s14_s16, 6   ;;  %s467_s13 = smov %s366_s15 }
 0x119   : > { %s468_s14 = smov %s471_s17  ;;  %s469_s15 = smov %s475_s18 }
 0x11a   :  { %13 = sbr.rel (!%p11_p10) target bundleno = 3 (0x3), region = 66 }

// kernel: _lambda_.6
= control target key start
LH: loop header
LB: loop body
LE: loop exit
PB: predicated region body
PF: predicated region fallthrough
CT: control target
= control target key end

     0   :  { %vm37_vm0 = vcmask 31744   ;;  %v426_v6 = vmov 0   ;;  %s619_s0 = inlined_call_operand.vmem [shape: f32[2,32,4], index: 0, kind: input, shape index: {}]   ;;  %s620_s1 = inlined_call_operand.vmem [shape: f32[32,1], index: 1, kind: input, shape index: {}]   ;;  %s621_s2 = inlined_call_operand.vmem [shape: f32[32,1], index: 2, kind: input, shape index: {}]   ;;  %s622_s3 = inlined_call_operand.vmem [shape: f32[4,4], index: 3, kind: input, shape index: {}]   ;;  %s623_s4 = inlined_call_operand.vmem [shape: f32[1,4], index: 4, kind: input, shape index: {}]   ;;  %s624_s5 = inlined_call_operand.vmem [shape: f32[5,4], index: 5, kind: input, shape index: {}]   ;;  %s625_s6 = inlined_call_operand.vmem [shape: f32[1,5], index: 6, kind: input, shape index: {}]   ;;  %s626_s7 = inlined_call_operand.vmem [shape: f32[2,4], index: 7, kind: output, shape index: {0}]   ;;  %s627_s8 = inlined_call_operand.hbm [shape: f32[2,5], index: 8, kind: output, shape index: {1}]  }
   0x1   :  { %v33_v0 = vld [vmem:[%s619_s0 + $0x20] sm:$0xff]  ;;  %v479_v1 = vld [vmem:[%s619_s0 + $0x10] sm:$0xff]  ;;  %383 = vset.pattern.permute.xlu1 %v426_v6  ;;  %384 = vset.pattern.permute.xlu2 %v426_v6  ;;  %v34_v7 = vld [vmem:[%s619_s0 + $0x28] sm:$0xff] }
   0x2   :  { %v29_v2 = vld [vmem:[%s619_s0] sm:$0xff]  ;;  %v50_v3 = vsel %vm37_vm0, %v33_v0, 0.0  ;;  %v44_v4 = vsel %vm37_vm0, %v479_v1, 0.0  ;;  %v35_v8 = vld [vmem:[%s619_s0 + $0x30] sm:$0xff]  ;;  %385 = vset.pattern.permute.xlu0 %v426_v6 }
   0x3   :  { %v38_v5 = vsel %vm37_vm0, %v29_v2, 0.0  ;;  %51 = vadd.xlane.f32.xlu1 %v50_v3  ;;  %45 = vadd.xlane.f32.xlu2 %v44_v4 }
   0x4   :  { %39 = vadd.xlane.f32.xlu0 %v38_v5 }
   0x5   :  { %14 = vsyncpa [#allocation3], 0  ;;  %v30_v9 = vld [vmem:[%s619_s0 + $0x8] sm:$0xff]  ;;  %v53_v10 = vsel %vm37_vm0, %v34_v7, 0.0  ;;  %v56_v11 = vsel %vm37_vm0, %v35_v8, 0.0  ;;  %v36_v13 = vld [vmem:[%s619_s0 + $0x38] sm:$0xff] }
   0x6   :  { %v41_v12 = vsel %vm37_vm0, %v30_v9, 0.0  ;;  %v32_v14 = vld [vmem:[%s619_s0 + $0x18] sm:$0xff]  ;;  %v59_v15 = vsel %vm37_vm0, %v36_v13, 0.0  ;;  %v171_v17 = vld [vmem:[%s620_s1 + $0x8] sm:$0xff]  ;;  %v170_v18 = vld [vmem:[%s620_s1] sm:$0xff]  ;;  %vm277_vm13 = vcmask 1041409  }
   0x7   :  { %v47_v16 = vsel %vm37_vm0, %v32_v14, 0.0  ;;  %v203_v59 = vld [vmem:[%s621_s2 + $0x8] sm:$0xff]  ;;  %v202_v60 = vld [vmem:[%s621_s2] sm:$0xff]  ;;  %v204_v61 = vld [vmem:[%s621_s2 + $0x10] sm:$0xff]  ;;  %s427_s18 = smov [#allocation2]   ;;  %s365_s22 = sshll.u32 %s627_s8, 4  ;;  %s366_s22 = int_to_ptr.hbm [resolvable:$true] %s365_s22 }
   0x8   :  { %v172_v62 = vld [vmem:[%s620_s1 + $0x10] sm:$0xff]  ;;  %v173_v63 = vld [vmem:[%s620_s1 + $0x18] sm:$0xff]  ;;  %s363_s19 = sshll.u32 %s427_s18, 4  ;;  %vm354_vm14 = vcmask 33792   ;;  %s364_s19 = int_to_ptr.vmem [resolvable:$true] %s363_s19 }
   0xb   :  { %54 = vadd.xlane.f32.xlu1 %v53_v10  ;;  %57 = vadd.xlane.f32.xlu2 %v56_v11 }
   0xc   :  { %42 = vadd.xlane.f32.xlu0 %v41_v12 }
  0x13   :  { %60 = vadd.xlane.f32.xlu1 %v59_v15 }
  0x14   :  { %48 = vadd.xlane.f32.xlu0 %v47_v16 }
  0x23   :  { %181 = vperm.xlu2 %384, %v171_v17  }
  0x2c   :  { %176 = vperm.xlu1 %383, %v170_v18  }
  0x76   :  { %v52_v19 = vpop.xlane.xlu1 %51  ;;  %v46_v20 = vpop.xlane.xlu2 %45 }
  0x77   :  { %v40_v21 = vpop.xlane.xlu0 %39 }
  0x78   :  { %v62_v22 = vadd.f32 %v52_v19, %v40_v21 }
  0x7a   :  { %v66_v23 = vmul.f32 0.125, %v62_v22 }
  0x7c   :  { %v514_v24 = vsub.f32 %v29_v2, %v66_v23  ;;  %v516_v25 = vsub.f32 %v33_v0, %v66_v23  ;;  %v205_v0 = vld [vmem:[%s621_s2 + $0x18] sm:$0xff] }
  0x7e   :  { %v55_v26 = vpop.xlane.xlu1 %54  ;;  %v58_v27 = vpop.xlane.xlu2 %57  ;;  %v82_v28 = vmul.f32 %v516_v25, %v516_v25  ;;  %v78_v29 = vmul.f32 %v514_v24, %v514_v24 }
  0x7f   :  { %v64_v30 = vadd.f32 %v58_v27, %v46_v20  ;;  %v43_v31 = vpop.xlane.xlu0 %42 }
  0x80   :  { %v63_v32 = vadd.f32 %v55_v26, %v43_v31  ;;  %v98_v33 = vsel %vm37_vm0, %v82_v28, 0.0  ;;  %v86_v34 = vsel %vm37_vm0, %v78_v29, 0.0 }
  0x81   :  { %v68_v35 = vmul.f32 0.125, %v64_v30  ;;  %99 = vadd.xlane.f32.xlu1 %v98_v33  ;;  %87 = vadd.xlane.f32.xlu2 %v86_v34 }
  0x82   :  { %v67_v36 = vmul.f32 0.125, %v63_v32 }
  0x83   :  { %v524_v37 = vsub.f32 %v35_v8, %v68_v35  ;;  %v540_v49 = vsub.f32 %v479_v1, %v68_v35 }
  0x84   :  { %v526_v38 = vsub.f32 %v30_v9, %v67_v36  ;;  %v528_v39 = vsub.f32 %v34_v7, %v67_v36 }
  0x85   :  { %v84_v40 = vmul.f32 %v524_v37, %v524_v37  ;;  %v80_v52 = vmul.f32 %v540_v49, %v540_v49 }
  0x86   :  { %v61_v41 = vpop.xlane.xlu1 %60  ;;  %v83_v42 = vmul.f32 %v528_v39, %v528_v39  ;;  %v79_v43 = vmul.f32 %v526_v38, %v526_v38  ;;  %v573_v1 = vpop.permute.xlu2 %181 }
  0x87   :  { %v49_v44 = vpop.xlane.xlu0 %48  ;;  %v104_v45 = vsel %vm37_vm0, %v84_v40, 0.0  ;;  %v92_v56 = vsel %vm37_vm0, %v80_v52, 0.0 }
  0x88   :  { %v65_v46 = vadd.f32 %v61_v41, %v49_v44  ;;  %v101_v47 = vsel %vm37_vm0, %v83_v42, 0.0  ;;  %v89_v48 = vsel %vm37_vm0, %v79_v43, 0.0  ;;  %v270_v42 = vld [vmem:[%s622_s3] sm:$0xf] }
  0x89   :  { %105 = vadd.xlane.f32.xlu1 %v104_v45  ;;  %102 = vadd.xlane.f32.xlu2 %v101_v47  ;;  %v326_v43 = vld [vmem:[%s624_s5] sm:$0x1f] }
  0x8a   :  { %v69_v50 = vmul.f32 0.125, %v65_v46  ;;  %90 = vadd.xlane.f32.xlu0 %v89_v48  ;;  %376 = vmatpush.xpose.msk.msra.mxu0 %vm37_vm0, %v270_v42 }
  0x8b   :  { %379 = vmatpush.xpose.msk.msra.mxu1 %vm37_vm0, %v326_v43 }
  0x8c   :  { %v542_v51 = vsub.f32 %v32_v14, %v69_v50  ;;  %v548_v54 = vsub.f32 %v36_v13, %v69_v50 }
  0x8e   :  { %v81_v53 = vmul.f32 %v542_v51, %v542_v51  ;;  %v85_v57 = vmul.f32 %v548_v54, %v548_v54 }
  0x90   :  { %v95_v55 = vsel %vm37_vm0, %v81_v53, 0.0  ;;  %v107_v58 = vsel %vm37_vm0, %v85_v57, 0.0 }
  0x91   :  { %96 = vadd.xlane.f32.xlu2 %v95_v55 }
  0x92   :  { %93 = vadd.xlane.f32.xlu0 %v92_v56 }
  0x9a   :  { %108 = vadd.xlane.f32.xlu0 %v107_v58 }
  0x9e   :  { %v575_v2 = vpop.permute.xlu1 %176 }
  0xa2   :  { %213 = vperm.xlu1 %383, %v203_v59  }
  0xa9   :  { %208 = vperm.xlu2 %384, %v202_v60  }
  0xaa   :  { %218 = vperm.xlu1 %383, %v204_v61  }
  0xae   :  { %186 = vperm.xlu0 %385, %v172_v62  }
  0xb1   :  { %191 = vperm.xlu2 %384, %v173_v63  }
  0xb9   :  { %223 = vperm.xlu2 %384, %v205_v0  }
  0xf4   :  { %v100_v3 = vpop.xlane.xlu1 %99  ;;  %v88_v4 = vpop.xlane.xlu2 %87 }
  0xf5   :  { %v110_v5 = vadd.f32 %v100_v3, %v88_v4 }
  0xf7   :  { %v114_v6 = vmul.f32 0.125, %v110_v5 }
  0xf9   :  { %v118_v7 = vadd.f32 1e-05, %v114_v6 }
  0xfb   :  { %388 = vrsqrt.f32 %v118_v7  ;;  %vm128_vm3 = vweird.f32 %v118_v7 }
  0xfc   :  { %v103_v8 = vpop.xlane.xlu2 %102  ;;  %v106_v16 = vpop.xlane.xlu1 %105 }
  0xfd   :  { %v91_v9 = vpop.xlane.xlu0 %90 }
  0xfe   :  { %v111_v10 = vadd.f32 %v103_v8, %v91_v9 }
 0x100   :  { %v115_v11 = vmul.f32 0.125, %v111_v10 }
 0x101   :  { %v389_v12 = vpop.eup %388 }
 0x102   :  { %v123_v13 = vmul.f32 %v389_v12, %v118_v7  ;;  %v119_v14 = vadd.f32 1e-05, %v115_v11  ;;  %vm129_vm1 = vweird.f32 %v389_v12 }
 0x103   :  { %vm130_vm4 = vmor %vm128_vm3, %vm129_vm1  ;;  %vm324_vm3 = vcmask 25600  }
 0x104   :  { %390 = vrsqrt.f32 %v119_v14  ;;  %v124_v15 = vmul.f32 %v389_v12, %v123_v13  ;;  %v97_v26 = vpop.xlane.xlu2 %96  ;;  %vm138_vm5 = vweird.f32 %v119_v14 }
 0x105   :  { %v94_v17 = vpop.xlane.xlu0 %93 }
 0x106   :  { %v112_v18 = vadd.f32 %v106_v16, %v94_v17  ;;  %v125_v20 = vmul.f32 0.5, %v124_v15 }
 0x108   :  { %v116_v19 = vmul.f32 0.125, %v112_v18  ;;  %v126_v27 = vsub.f32 1.5, %v125_v20 }
 0x10a   :  { %v391_v21 = vpop.eup %390  ;;  %v120_v22 = vadd.f32 1e-05, %v116_v19  ;;  %v127_v33 = vmul.f32 %v389_v12, %v126_v27 }
 0x10b   :  { %v133_v23 = vmul.f32 %v391_v21, %v119_v14  ;;  %vm139_vm2 = vweird.f32 %v391_v21 }
 0x10c   :  { %392 = vrsqrt.f32 %v120_v22  ;;  %vm140_vm6 = vmor %vm138_vm5, %vm139_vm2  ;;  %v131_v45 = vsel %vm130_vm4, %v389_v12, %v127_v33  ;;  %v209_v46 = vpop.permute.xlu2 %208  ;;  %vm148_vm8 = vweird.f32 %v120_v22 }
 0x10d   :  { %v134_v28 = vmul.f32 %v391_v21, %v133_v23  ;;  %v109_v29 = vpop.xlane.xlu0 %108  ;;  %v162_v50 = vmul.f32 %v131_v45, %v514_v24  ;;  %v166_v52 = vmul.f32 %v131_v45, %v516_v25 }
 0x10e   :  { %v113_v30 = vadd.f32 %v109_v29, %v97_v26 }
 0x10f   :  { %v135_v31 = vmul.f32 0.5, %v134_v28  ;;  %v194_v61 = vmul.f32 %v575_v2, %v162_v50  ;;  %v198_v62 = vmul.f32 %v575_v2, %v166_v52 }
 0x110   :  { %v117_v32 = vmul.f32 0.125, %v113_v30 }
 0x111   :  { %v136_v34 = vsub.f32 1.5, %v135_v31  ;;  %v226_v5 = vadd.f32 %v209_v46, %v194_v61  ;;  %v230_v6 = vadd.f32 %v209_v46, %v198_v62 }
 0x112   :  { %v393_v35 = vpop.eup %392  ;;  %v121_v36 = vadd.f32 1e-05, %v117_v32 }
 0x113   :  { %v137_v40 = vmul.f32 %v391_v21, %v136_v34  ;;  %v143_v41 = vmul.f32 %v393_v35, %v120_v22  ;;  %vm149_vm7 = vweird.f32 %v393_v35  ;;  %v238_v16 = vmax.f32 %v230_v6, 0.0 }
 0x114   :  { %394 = vrsqrt.f32 %v121_v36  ;;  %v214_v53 = vpop.permute.xlu1 %213  ;;  %vm150_vm9 = vmor %vm148_vm8, %vm149_vm7  ;;  %v192_v4 = vpop.permute.xlu2 %191  ;;  %vm158_vm11 = vweird.f32 %v121_v36 }
 0x115   :  { %v144_v44 = vmul.f32 %v393_v35, %v143_v41  ;;  %v141_v47 = vsel %vm140_vm6, %v391_v21, %v137_v40  ;;  %v255_v29 = vsel %vm37_vm0, %v238_v16, 0.0 }
 0x116   :  { %v163_v55 = vmul.f32 %v141_v47, %v526_v38  ;;  %v167_v56 = vmul.f32 %v141_v47, %v528_v39 }
 0x117   :  { %v145_v48 = vmul.f32 0.5, %v144_v44 }
 0x118   :  { %v195_v63 = vmul.f32 %v573_v1, %v163_v55  ;;  %v199_v24 = vmul.f32 %v573_v1, %v167_v56 }
 0x119   :  { %v146_v57 = vsub.f32 1.5, %v145_v48 }
 0x11a   :  { %v395_v58 = vpop.eup %394  ;;  %v227_v7 = vadd.f32 %v214_v53, %v195_v63  ;;  %v231_v8 = vadd.f32 %v214_v53, %v199_v24  ;;  %v386_v24 = vld [vmem:[%s623_s4] ss:$0 sm:$0xff] }
 0x11b   :  { %v153_v59 = vmul.f32 %v395_v58, %v121_v36  ;;  %v147_v60 = vmul.f32 %v393_v35, %v146_v57  ;;  %vm159_vm10 = vweird.f32 %v395_v58 }
 0x11c   :  { %v219_v12 = vpop.permute.xlu1 %218  ;;  %v235_v15 = vmax.f32 %v227_v7, 0.0  ;;  %vm160_vm12 = vmor %vm158_vm11, %vm159_vm10  ;;  %v224_v30 = vpop.permute.xlu2 %223 }
 0x11d   :  { %v154_v25 = vmul.f32 %v395_v58, %v153_v59  ;;  %v151_v0 = vsel %vm150_vm9, %v393_v35, %v147_v60 }
 0x11e   :  { %v164_v38 = vmul.f32 %v151_v0, %v540_v49  ;;  %v168_v39 = vmul.f32 %v151_v0, %v524_v37  ;;  %v239_v49 = vmax.f32 %v231_v8, 0.0  ;;  %v234_v37 = vmax.f32 %v226_v5, 0.0 }
 0x11f   :  { %v155_v3 = vmul.f32 0.5, %v154_v25  ;;  %v243_v22 = vsel %vm37_vm0, %v235_v15, 0.0  ;;  %v387_v25 = vld [vmem:[%s625_s6] ss:$0 sm:$0xff] }
 0x120   :  { %v187_v9 = vpop.permute.xlu0 %186  ;;  %v256_v23 = vsel %vm37_vm0, %v239_v49, 0.0  ;;  %v242_v28 = vsel %vm37_vm0, %v234_v37, 0.0 }
 0x121   :  { %v156_v10 = vsub.f32 1.5, %v155_v3  ;;  %v196_v2 = vmul.f32 %v187_v9, %v164_v38  ;;  %v200_v11 = vmul.f32 %v187_v9, %v168_v39  ;;  %v257_v34 = vadd.f32 %v256_v23, %v255_v29 }
 0x123   :  { %v157_v1 = vmul.f32 %v395_v58, %v156_v10  ;;  %v228_v13 = vadd.f32 %v219_v12, %v196_v2  ;;  %v232_v14 = vadd.f32 %v219_v12, %v200_v11 }
 0x125   :  { %v161_v17 = vsel %vm160_vm12, %v395_v58, %v157_v1  ;;  %v236_v20 = vmax.f32 %v228_v13, 0.0  ;;  %v240_v21 = vmax.f32 %v232_v14, 0.0 }
 0x126   :  { %v165_v18 = vmul.f32 %v161_v17, %v542_v51  ;;  %v169_v19 = vmul.f32 %v161_v17, %v548_v54  ;;  %v244_v54 = vadd.f32 %v243_v22, %v242_v28 }
 0x127   :  { %v245_v33 = vsel %vm37_vm0, %v236_v20, 0.0  ;;  %v258_v51 = vsel %vm37_vm0, %v240_v21, 0.0 }
 0x128   :  { %v197_v26 = vmul.f32 %v192_v4, %v165_v18  ;;  %v201_v27 = vmul.f32 %v192_v4, %v169_v19  ;;  %v246_v40 = vadd.f32 %v245_v33, %v244_v54  ;;  %v259_v41 = vadd.f32 %v258_v51, %v257_v34 }
 0x12a   :  { %v229_v31 = vadd.f32 %v224_v30, %v197_v26  ;;  %v233_v32 = vadd.f32 %v224_v30, %v201_v27 }
 0x12c   :  { %v237_v35 = vmax.f32 %v229_v31, 0.0  ;;  %v241_v36 = vmax.f32 %v233_v32, 0.0 }
 0x12e   :  { %v247_v42 = vsel %vm37_vm0, %v237_v35, 0.0  ;;  %v260_v43 = vsel %vm37_vm0, %v241_v36, 0.0 }
 0x12f   :  { %v248_v44 = vadd.f32 %v247_v42, %v246_v40  ;;  %v261_v45 = vadd.f32 %v260_v43, %v259_v41 }
 0x131   :  { %v249_v46 = vrot.slane %v248_v44, 4  ;;  %v262_v47 = vrot.slane %v261_v45, 4 }
 0x133   :  { %v250_v48 = vadd.f32 %v249_v46, %v248_v44  ;;  %v263_v50 = vadd.f32 %v262_v47, %v261_v45 }
 0x135   :  { %v251_v52 = vrot.slane %v250_v48, 2  ;;  %v264_v53 = vrot.slane %v263_v50, 2 }
 0x137   :  { %v252_v55 = vadd.f32 %v251_v52, %v250_v48  ;;  %v265_v56 = vadd.f32 %v264_v53, %v263_v50 }
 0x139   :  { %v253_v57 = vrot.slane %v252_v55, 1  ;;  %v266_v58 = vrot.slane %v265_v56, 1 }
 0x13b   :  { %v254_v59 = vadd.f32 %v253_v57, %v252_v55  ;;  %v267_v60 = vadd.f32 %v266_v58, %v265_v56 }
 0x13d   :  { %v268_v61 = vmul.f32 0.03125, %v254_v59  ;;  %v269_v62 = vmul.f32 0.03125, %v267_v60 }
 0x13f   :  { %v278_v63 = vsel %vm277_vm13, %v269_v62, %v268_v61 }
 0x140   :  { %377 = vmatmul.msk.f32.vlgmr.msra.gmra.mxu0 %vm37_vm0, %v278_v63  ;;  %380 = vmatmul.msk.f32.vlgmr.msra.gmra.mxu1 %vm37_vm0, %v278_v63 }
 0x1bd   :  { %v301_v0 = vpop.f32.mrf.mxu0  ;;  %v351_v38 = vpop.f32.mrf.mxu1 }
 0x1be   :  { %v302_v39 = vadd.f32 %v386_v24, %v301_v0  ;;  %v352_v3 = vadd.f32 %v387_v25, %v351_v38 }
 0x1c0   :  { %v378_v4 = vmul.f32 -1.442695, %v302_v39  ;;  %355 = vst.msk [vmem:[#allocation2] sm:$0x3] %vm354_vm14, %v352_v3 }
 0x1c1   :  { %368 = dma.vmem_to_hbm [thread:$0]  %s364_s19, 32, %s366_s22, [#allocation3]  }
 0x1c2   :  { %396 = vpow2.f32 %v378_v4 }
 0x1c8   :  { %v397_v5 = vpop.eup %396 }
 0x1c9   :  { %v307_v6 = vadd.f32 1.0, %v397_v5 }
 0x1cb   :  { %398 = vrcp.f32 %v307_v6  ;;  %v319_v10 = vand.u32 2147483648, %v307_v6  ;;  %v317_v11 = vand.u32 2147483647, %v307_v6  ;;  %vm313_vm0 = vweird.f32 %v307_v6 }
 0x1cd   :  { %v320_v1 = vor.u32 1.1754944e-38, %v319_v10  ;;  %vm318_vm2 = vcmp.eq.f32.partialorder %v317_v11, 8.507059e+37 }
 0x1d1   :  { %v399_v7 = vpop.eup %398 }
 0x1d2   :  { %v309_v8 = vmul.f32 %v399_v7, %v307_v6  ;;  %vm314_vm15 = vweird.f32 %v399_v7 }
 0x1d3   :  { %vm315_vm1 = vmor %vm313_vm0, %vm314_vm15 }
 0x1d4   :  { %v310_v9 = vsub.f32 1.0, %v309_v8 }
 0x1d6   :  { %v311_v2 = vmul.f32 %v399_v7, %v310_v9 }
 0x1d8   :  { %v312_v12 = vadd.f32 %v399_v7, %v311_v2 }
 0x1da   :  { %v316_v13 = vsel %vm315_vm1, %v399_v7, %v312_v12 }
 0x1db   :  { %v321_v14 = vsel %vm318_vm2, %v320_v1, %v316_v13 }
 0x1dc   :  { %v323_v15 = vadd.f32 1.0, %v321_v14 }
 0x1de   :  { %325 = vst.msk [vmem:[%s626_s7] sm:$0x3] %vm324_vm3, %v323_v15 }
 0x1df   :  { %424 = dma.done.wait [#allocation3], 32  }
 0x1e0   :  { %425 = vsyncadd [#allocation3], 4294967264 }
 0x1e1   :  { %375 = vsyncpa [#allocation3], 1 }

// kernel: _lambda_.5
= control target key start
LH: loop header
LB: loop body
LE: loop exit
PB: predicated region body
PF: predicated region fallthrough
CT: control target
= control target key end

     0   :  { %s994_s13 = smov 0   ;;  %s996_s14 = smov 0   ;;  %s1153_s0 = inlined_call_operand.vmem [shape: f32[2,4,256], index: 0, kind: input, shape index: {}]   ;;  %s1154_s1 = inlined_call_operand.vmem [shape: f32[4,4], index: 1, kind: input, shape index: {}]   ;;  %s1155_s2 = inlined_call_operand.vmem [shape: f32[4,1], index: 2, kind: input, shape index: {}]   ;;  %s1156_s3 = inlined_call_operand.vmem [shape: f32[4,1], index: 3, kind: input, shape index: {}]   ;;  %s1157_s4 = inlined_call_operand.vmem [shape: f32[4,1], index: 4, kind: input, shape index: {}]   ;;  %s1158_s5 = inlined_call_operand.vmem [shape: f32[4,1], index: 5, kind: input, shape index: {}]   ;;  %s1159_s6 = inlined_call_operand.vmem [shape: f32[32,4], index: 6, kind: input, shape index: {}]   ;;  %s1160_s7 = inlined_call_operand.vmem [shape: f32[32,1], index: 7, kind: input, shape index: {}]   ;;  %s1161_s8 = inlined_call_operand.vmem [shape: f32[32,1], index: 8, kind: input, shape index: {}]   ;;  %s1162_s9 = inlined_call_operand.vmem [shape: f32[32,4], index: 9, kind: input, shape index: {}]   ;;  %s1163_s10 = inlined_call_operand.vmem [shape: f32[2,32,4], index: 10, kind: output, shape index: {}]  }
   0x1   :  { %s998_s15 = smov 0   ;;  %s1000_s16 = smov 0  }
   0x2   :  { %s1002_s17 = smov 0  }
   0x3 LB: > { %s29_s18 = sadd.s32 1, %s926_s15  ;;  %s32_s19 = sadd.s32 1, %s930_s16  ;;  %s934_s17 = sphi %s1002_s17, %s20_s17   ;;  %s930_s16 = sphi %s1000_s16, %s1167_s16   ;;  %s926_s15 = sphi %s998_s15, %s1166_s15   ;;  %s922_s14 = sphi %s996_s14, %s1165_s14   ;;  %s918_s13 = sphi %s994_s13, %s1164_s13  }
   0x4   : > { %p30_p0 = scmp.ge.s32.totalorder %s29_s18, 2  ;;  %p817_p1 = scmp.ge.s32.totalorder %s934_s17, 1 }
   0x5   : > { %p329_p2 = scmp.lt.s32.totalorder %s934_s17, 5 }
   0x6   : > { %s1169_s18 = smov (%p30_p0, %s29_s18), 0  ;;  %s1171_s19 = smov (!%p30_p0, %s32_s19), %s930_s16 }
   0x7   : > { %p330_p3 = pnand %p817_p1, %p329_p2  ;;  %p34_p4 = scmp.ge.s32.totalorder %s1171_s19, 2 }
   0x8   : > { %p370_p5 = scmp.lt.s32.totalorder (!%p330_p3), %s922_s14, 1  ;;  %p372_p6 = scmp.lt.s32.totalorder (!%p330_p3), %s918_s13, 1 }
   0x9   : > { %s1173_s19 = smov (%p34_p4, %s1171_s19), 0  ;;  %333 = sbr.rel (%p330_p3) target bundleno = 683 (0x2ab), region = 60 }
   0xa   : > { %p822_p7 = scmp.ne.s32.totalorder (!%p330_p3), %s918_s13, 0 }
   0xe   : > { %s1175_s14 = smov (!%p370_p5, %s922_s14), 1 }
   0xf   : > { %s373_s20 = scalar_select %p372_p6, %s918_s13, 1 }
  0x10   : > { %s818_s21 = sshll.u32 %s1175_s14, 1  ;;  %s833_s22 = sshll.u32 %s1175_s14, 5 }
  0x11   : > { %s375_s23 = sadd.s32 %s818_s21, %s373_s20  ;;  %s1031_s26 = scalar_lea.vmem %s1163_s10, %s833_s22 }
  0x12   : > { %s819_s27 = sshll.u32 %s375_s23, 2  ;;  %386 = sbr.rel (%p822_p7) target bundleno = 32 (0x20), region = 64 }
  0x13   : > { %s377_s30 = scalar_lea.vmem %s1153_s0, %s819_s27 }
  0x17   : > { %vm387_vm0 = vcmask 31744   ;;  %v936_v0 = vmov 0.0   ;;  %vm392_vm1 = vcmask 7168  }
  0x18   : > { %388 = vst.msk [vmem:[%s1031_s26] sm:$0xff] %vm387_vm0, %v936_v0 }
  0x19   : > { %389 = vst.msk [vmem:[%s1031_s26 + $0x8] sm:$0xff] %vm387_vm0, %v936_v0 }
  0x1a   : > { %390 = vst.msk [vmem:[%s1031_s26 + $0x10] sm:$0xff] %vm387_vm0, %v936_v0 }
  0x1b   : > { %391 = vst.msk [vmem:[%s1031_s26 + $0x18] sm:$0xff] %vm387_vm0, %v936_v0 }
  0x1c   : > { %393 = vst.msk [vmem:[#allocation2] sm:$0xff] %vm392_vm1, %v936_v0 }
  0x1d   : > { %394 = vst.msk [vmem:[#allocation2 + $0x8] sm:$0xff] %vm392_vm1, %v936_v0 }
  0x1e   : > { %395 = vst.msk [vmem:[#allocation2 + $0x10] sm:$0xff] %vm392_vm1, %v936_v0 }
  0x1f   : > { %396 = vst.msk [vmem:[#allocation2 + $0x18] sm:$0xff] %vm392_vm1, %v936_v0 }
  0x20 PF: > { %v459_v1 = vld [vmem:[%s1158_s5] sm:$0xf]  ;;  %vm423_vm2 = vcmask 1043456   ;;  %v937_v3 = vmov 0   ;;  %vm419_vm3 = vcmask 31744   ;;  %v524_v15 = vld [vmem:[%s1160_s7 + $0x8] sm:$0xff] }
  0x21   : > { %v418_v2 = vld [vmem:[%s377_s30] sm:$0xf]  ;;  %880 = vset.pattern.permute.xlu1 %v937_v3  ;;  %879 = vset.pattern.permute.xlu0 %v937_v3  ;;  %v525_v19 = vld [vmem:[%s1160_s7 + $0x10] sm:$0xff]  ;;  %v558_v21 = vld [vmem:[%s1161_s8 + $0x18] sm:$0xff]  ;;  %vm688_vm11 = vcmask 7168   ;;  %p830_p8 = scmp.ne.s32.totalorder %s918_s13, 1 }
  0x22   : > { %823 = vmatpush.msk.msra.mxu0 %vm423_vm2, %v418_v2  ;;  %v417_v4 = vld [vmem:[%s1154_s1] sm:$0xf]  ;;  %462 = vperm.xlu1 %880, %v459_v1   ;;  %v526_v27 = vld [vmem:[%s1160_s7 + $0x18] sm:$0xff]  ;;  %v557_v28 = vld [vmem:[%s1161_s8 + $0x10] sm:$0xff] }
  0x23   : > { %v397_v5 = vld [vmem:[%s1155_s2] sm:$0xf]  ;;  %824 = vmatmul.msk.f32.vlgmr.msra.gmra.mxu0 %vm419_vm3, %v417_v4  ;;  %881 = vset.pattern.permute.xlu2 %v937_v3  ;;  %v556_v30 = vld [vmem:[%s1161_s8 + $0x8] sm:$0xff]  ;;  %v477_v40 = vld [vmem:[%s1159_s6 + $0x10] sm:$0xff] }
  0x24   : > { %v398_v6 = vmul.f32 0.001953125, %v397_v5  ;;  %v399_v7 = vld [vmem:[%s1156_s3] sm:$0xf]  ;;  %534 = vperm.xlu2 %881, %v524_v15   ;;  %v476_v39 = vld [vmem:[%s1159_s6 + $0x8] sm:$0xff]  ;;  %v478_v41 = vld [vmem:[%s1159_s6 + $0x18] sm:$0xff] }
  0x25   : > { %v400_v8 = vmul.f32 0.001953125, %v399_v7  ;;  %v523_v11 = vld [vmem:[%s1160_s7] sm:$0xff] }
  0x26   : > { %449 = vperm.xlu0 %879, %v398_v6   ;;  %v401_v9 = vmul.f32 %v398_v6, %v398_v6  ;;  %v555_v14 = vld [vmem:[%s1161_s8] sm:$0xff] }
  0x27   : > { %v415_v24 = vld [vmem:[%s1157_s4] sm:$0xf] }
  0x28   : > { %v402_v10 = vsub.f32 %v400_v8, %v401_v9  ;;  %v475_v38 = vld [vmem:[%s1159_s6] sm:$0xff] }
  0x2a   : > { %v403_v12 = vmax.f32 %v402_v10, 0.0  ;;  %529 = vperm.xlu1 %880, %v523_v11  }
  0x2c   : > { %v404_v13 = vadd.f32 1e-05, %v403_v12  ;;  %539 = vperm.xlu2 %881, %v525_v19  }
  0x2e   : > { %882 = vrsqrt.f32 %v404_v13  ;;  %vm411_vm4 = vweird.f32 %v404_v13 }
  0x32   : > { %561 = vperm.xlu1 %880, %v555_v14  }
  0x34   : > { %v883_v16 = vpop.eup %882  ;;  %566 = vperm.xlu2 %881, %v556_v30  }
  0x35   : > { %v406_v17 = vmul.f32 %v883_v16, %v404_v13  ;;  %vm412_vm5 = vweird.f32 %v883_v16 }
  0x36   : > { %vm413_vm6 = vmor %vm411_vm4, %vm412_vm5 }
  0x37   : > { %v407_v18 = vmul.f32 %v883_v16, %v406_v17 }
  0x39   : > { %v408_v20 = vmul.f32 0.5, %v407_v18 }
  0x3a   : > { %576 = vperm.xlu1 %880, %v558_v21  }
  0x3b   : > { %v409_v22 = vsub.f32 1.5, %v408_v20 }
  0x3d   : > { %v410_v23 = vmul.f32 %v883_v16, %v409_v22 }
  0x3f   : > { %v414_v25 = vsel %vm413_vm6, %v883_v16, %v410_v23 }
  0x40   : > { %v416_v26 = vmul.f32 %v415_v24, %v414_v25 }
  0x42   : > { %455 = vperm.xlu0 %879, %v416_v26  }
  0x4a   : > { %544 = vperm.xlu0 %879, %v526_v27  }
  0x52   : > { %571 = vperm.xlu0 %879, %v557_v28  }
  0x7e   : > { %v535_v47 = vpop.permute.xlu2 %534 }
  0x86   : > { %v540_v52 = vpop.permute.xlu2 %539 }
  0x8e   : > { %v567_v63 = vpop.permute.xlu2 %566 }
  0x94   : > { %v463_v35 = vpop.permute.xlu1 %462 }
  0x98   : > { %v450_v29 = vpop.permute.xlu0 %449 }
  0x9c   : > { %v530_v48 = vpop.permute.xlu1 %529 }
  0xa0   : > { %v444_v31 = vpop.f32.mrf.mxu0 }
  0xa1   : > { %v452_v32 = vsub.f32 %v444_v31, %v450_v29 }
  0xa4   : > { %v562_v53 = vpop.permute.xlu1 %561 }
  0xac   : > { %v577_v6 = vpop.permute.xlu1 %576 }
  0xb4   : > { %v456_v33 = vpop.permute.xlu0 %455 }
  0xb5   : > { %v458_v34 = vmul.f32 %v456_v33, %v452_v32 }
  0xb7   : > { %v465_v36 = vadd.f32 %v463_v35, %v458_v34 }
  0xb9   : > { %v466_v37 = vmax.f32 %v465_v36, 0.0 }
  0xbb   : > { %825 = vmatpush.msk.msrb.mxu0 %vm423_vm2, %v466_v37  ;;  %834 = vmatpush.msk.msra.mxu1 %vm423_vm2, %v466_v37  ;;  %v467_v42 = vmul.f32 %v466_v37, %v466_v37 }
  0xbc   : > { %650 = vmatpush.xpose.msra.mxu2 %v466_v37  ;;  %835 = vmatpush.xpose.msra.mxu3 %v466_v37  ;;  %v545_v55 = vpop.permute.xlu0 %544 }
  0xbd   : > { %826 = vmatmul.msk.f32.vlgmr.msrb.gmra.mxu0 %vm419_vm3, %v475_v38  ;;  %827 = vmatmul.msk.f32.vlgmr.msra.gmra.mxu1 %vm419_vm3, %v476_v39  ;;  %v468_v43 = vsel %vm423_vm2, %v467_v42, 0.0 }
  0xbe   : > { %v469_v44 = vrot.slane %v468_v43, 4 }
  0xc0   : > { %v470_v45 = vadd.f32 %v469_v44, %v468_v43 }
  0xc2   : > { %v471_v46 = vrot.slane %v470_v45, 2 }
  0xc4   : > { %v472_v49 = vadd.f32 %v471_v46, %v470_v45  ;;  %v572_v7 = vpop.permute.xlu0 %571 }
  0xc5   : > { %828 = vmatmul.msk.f32.gmra.mxu1 %vm419_vm3, %v477_v40 }
  0xc6   : > { %v473_v51 = vrot.slane %v472_v49, 1 }
  0xc8   : > { %v474_v54 = vadd.f32 %v473_v51, %v472_v49 }
  0xca   : > { %v548_v58 = vmul.f32 %v535_v47, %v474_v54  ;;  %v547_v59 = vmul.f32 %v530_v48, %v474_v54  ;;  %v549_v60 = vmul.f32 %v540_v52, %v474_v54  ;;  %v550_v0 = vmul.f32 %v545_v55, %v474_v54  ;;  %v674_v54 = vld [vmem:[#allocation2 + $0x10] sm:$0xff]  ;;  %v673_v55 = vld [vmem:[#allocation2 + $0x8] sm:$0xff] }
  0xcd   : > { %829 = vmatmul.msk.f32.gmra.mxu1 %vm419_vm3, %v478_v41 }
 0x13a   : > { %v514_v50 = vpop.f32.mrf.mxu1  ;;  %v511_v57 = vpop.f32.mrf.mxu0 }
 0x13b   : > { %v551_v61 = vadd.f32 %v547_v59, %v511_v57  ;;  %v552_v62 = vadd.f32 %v548_v58, %v514_v50 }
 0x13d   : > { %v579_v3 = vadd.f32 %v562_v53, %v551_v61  ;;  %v580_v4 = vadd.f32 %v567_v63, %v552_v62  ;;  %v675_v63 = vld [vmem:[#allocation2 + $0x18] sm:$0xff] }
 0x13f   : > { %v583_v10 = vmax.f32 %v579_v3, %v580_v4 }
 0x142   : > { %v517_v56 = vpop.f32.mrf.mxu1 }
 0x143   : > { %v553_v1 = vadd.f32 %v549_v60, %v517_v56  ;;  %v672_v56 = vld [vmem:[#allocation2] sm:$0xff] }
 0x145   : > { %v581_v8 = vadd.f32 %v572_v7, %v553_v1 }
 0x14a   : > { %v520_v2 = vpop.f32.mrf.mxu1 }
 0x14b   : > { %v554_v5 = vadd.f32 %v550_v0, %v520_v2  ;;  %v632_v2 = vld [vmem:[%s1031_s26 + $0x8] sm:$0xff] }
 0x14d   : > { %v582_v9 = vadd.f32 %v577_v6, %v554_v5 }
 0x14f   : > { %v584_v11 = vmax.f32 %v581_v8, %v582_v9 }
 0x151   : > { %v585_v12 = vmax.f32 %v583_v10, %v584_v11  ;;  %v634_v11 = vld [vmem:[%s1031_s26 + $0x18] sm:$0xff] }
 0x153   : > { %v586_v13 = vrot.slane %v585_v12, 4 }
 0x155   : > { %v587_v14 = vmax.f32 %v585_v12, %v586_v13 }
 0x157   : > { %v588_v15 = vrot.slane %v587_v14, 2 }
 0x159   : > { %v589_v16 = vmax.f32 %v587_v14, %v588_v15 }
 0x15b   : > { %v590_v17 = vrot.slane %v589_v16, 1 }
 0x15d   : > { %v591_v18 = vmax.f32 %v589_v16, %v590_v17 }
 0x15f   : > { %v592_v19 = vsub.f32 %v579_v3, %v591_v18  ;;  %v593_v20 = vsub.f32 %v580_v4, %v591_v18  ;;  %v594_v21 = vsub.f32 %v581_v8, %v591_v18  ;;  %v595_v22 = vsub.f32 %v582_v9, %v591_v18  ;;  %v631_v3 = vld [vmem:[%s1031_s26] sm:$0xff]  ;;  %v633_v8 = vld [vmem:[%s1031_s26 + $0x10] sm:$0xff] }
 0x161   : > { %v596_v23 = vmul.f32 1.442695, %v592_v19  ;;  %v598_v24 = vmul.f32 1.442695, %v593_v20  ;;  %v600_v25 = vmul.f32 1.442695, %v594_v21 }
 0x162   : > { %v602_v26 = vmul.f32 1.442695, %v595_v22 }
 0x163   : > { %884 = vpow2.f32 %v596_v23 }
 0x164   : > { %886 = vpow2.f32 %v598_v24 }
 0x165   : > { %888 = vpow2.f32 %v600_v25 }
 0x166   : > { %890 = vpow2.f32 %v602_v26 }
 0x169   : > { %v885_v27 = vpop.eup %884 }
 0x16a   : > { %v887_v28 = vpop.eup %886 }
 0x16b   : > { %v604_v29 = vadd.f32 %v887_v28, %v885_v27  ;;  %v889_v30 = vpop.eup %888 }
 0x16c   : > { %v891_v32 = vpop.eup %890 }
 0x16d   : > { %v605_v31 = vadd.f32 %v889_v30, %v604_v29 }
 0x16f   : > { %v606_v33 = vadd.f32 %v891_v32, %v605_v31 }
 0x171   : > { %v607_v34 = vrot.slane %v606_v33, 4 }
 0x173   : > { %v608_v35 = vadd.f32 %v607_v34, %v606_v33 }
 0x175   : > { %v609_v36 = vrot.slane %v608_v35, 2 }
 0x177   : > { %v610_v37 = vadd.f32 %v609_v36, %v608_v35 }
 0x179   : > { %v611_v38 = vrot.slane %v610_v37, 1 }
 0x17b   : > { %v612_v39 = vadd.f32 %v611_v38, %v610_v37 }
 0x17d   : > { %892 = vrcp.f32 %v612_v39  ;;  %v624_v43 = vand.u32 2147483648, %v612_v39  ;;  %v622_v45 = vand.u32 2147483647, %v612_v39  ;;  %vm618_vm8 = vweird.f32 %v612_v39 }
 0x17f   : > { %v625_v47 = vor.u32 1.1754944e-38, %v624_v43  ;;  %vm623_vm10 = vcmp.eq.f32.partialorder %v622_v45, 8.507059e+37 }
 0x183   : > { %v893_v40 = vpop.eup %892 }
 0x184   : > { %v614_v41 = vmul.f32 %v893_v40, %v612_v39  ;;  %vm619_vm7 = vweird.f32 %v893_v40 }
 0x185   : > { %vm620_vm9 = vmor %vm618_vm8, %vm619_vm7 }
 0x186   : > { %v615_v42 = vsub.f32 1.0, %v614_v41 }
 0x188   : > { %v616_v44 = vmul.f32 %v893_v40, %v615_v42 }
 0x18a   : > { %v617_v46 = vadd.f32 %v893_v40, %v616_v44 }
 0x18c   : > { %v621_v48 = vsel %vm620_vm9, %v893_v40, %v617_v46 }
 0x18d   : > { %v626_v49 = vsel %vm623_vm10, %v625_v47, %v621_v48 }
 0x18e   : > { %v629_v50 = vmul.f32 %v889_v30, %v626_v49  ;;  %v628_v51 = vmul.f32 %v887_v28, %v626_v49  ;;  %v627_v52 = vmul.f32 %v885_v27, %v626_v49  ;;  %v630_v53 = vmul.f32 %v891_v32, %v626_v49 }
 0x190   : > { %680 = vadd.xlane.f32.xlu1 %v629_v50  ;;  %678 = vadd.xlane.f32.xlu0 %v628_v51 }
 0x191   : > { %654 = vmatmul.f32.vlgmr.msra.gmra.mxu3 %v628_v51  ;;  %676 = vadd.xlane.f32.xlu2 %v627_v52 }
 0x192   : > { %651 = vmatmul.f32.vlgmr.msra.gmra.mxu2 %v627_v52 }
 0x199   : > { %657 = vmatmul.f32.gmra.mxu3 %v629_v50  ;;  %682 = vadd.xlane.f32.xlu2 %v630_v53 }
 0x1a1   : > { %660 = vmatmul.f32.gmra.mxu3 %v630_v53 }
 0x203   : > { %v681_v57 = vpop.xlane.xlu1 %680  ;;  %v679_v58 = vpop.xlane.xlu0 %678 }
 0x204   : > { %v686_v59 = vadd.f32 %v681_v57, %v674_v54  ;;  %v685_v60 = vadd.f32 %v679_v58, %v673_v55  ;;  %v677_v61 = vpop.xlane.xlu2 %676 }
 0x205   : > { %v684_v62 = vadd.f32 %v677_v61, %v672_v56 }
 0x206   : > { %691 = vst.msk [vmem:[#allocation2 + $0x10] sm:$0xff] %vm688_vm11, %v686_v59 }
 0x207   : > { %690 = vst.msk [vmem:[#allocation2 + $0x8] sm:$0xff] %vm688_vm11, %v685_v60 }
 0x208   : > { %689 = vst.msk [vmem:[#allocation2] sm:$0xff] %vm688_vm11, %v684_v62 }
 0x20c   : > { %v683_v0 = vpop.xlane.xlu2 %682 }
 0x20d   : > { %v687_v1 = vadd.f32 %v683_v0, %v675_v63 }
 0x20f   : > { %692 = vst.msk [vmem:[#allocation2 + $0x18] sm:$0xff] %vm688_vm11, %v687_v1 }
 0x214   : > { %v655_v4 = vpop.f32.mrf.mxu3 }
 0x215   : > { %v652_v5 = vpop.f32.mrf.mxu2  ;;  %v665_v6 = vadd.f32 %v655_v4, %v632_v2 }
 0x216   : > { %v664_v7 = vadd.f32 %v652_v5, %v631_v3 }
 0x217   : > { %669 = vst.msk [vmem:[%s1031_s26 + $0x8] sm:$0xff] %vm419_vm3, %v665_v6 }
 0x218   : > { %668 = vst.msk [vmem:[%s1031_s26] sm:$0xff] %vm419_vm3, %v664_v7 }
 0x21c   : > { %v658_v9 = vpop.f32.mrf.mxu3 }
 0x21d   : > { %v666_v10 = vadd.f32 %v658_v9, %v633_v8 }
 0x21f   : > { %670 = vst.msk [vmem:[%s1031_s26 + $0x10] sm:$0xff] %vm419_vm3, %v666_v10 }
 0x223   : > { %696 = sbr.rel (%p830_p8) target bundleno = 683 (0x2ab), region = 68 }
 0x224   : > { %v661_v12 = vpop.f32.mrf.mxu3 }
 0x225   : > { %v667_v13 = vadd.f32 %v661_v12, %v634_v11 }
 0x227   : > { %671 = vst.msk [vmem:[%s1031_s26 + $0x18] sm:$0xff] %vm419_vm3, %v667_v13 }
 0x228   : > { %v703_v14 = vld [vmem:[#allocation2 + $0x10] sm:$0xff]  ;;  %v701_v15 = vld [vmem:[#allocation2] sm:$0xff]  ;;  %v938_v16 = vmov 0   ;;  %v704_v17 = vld [vmem:[#allocation2 + $0x18] sm:$0xff] }
 0x229   : > { %895 = vset.pattern.permute.xlu1 %v938_v16  ;;  %894 = vset.pattern.permute.xlu0 %v938_v16  ;;  %v702_v18 = vld [vmem:[#allocation2 + $0x8] sm:$0xff]  ;;  %v707_v19 = vld [vmem:[%s1162_s9 + $0x10] sm:$0xff]  ;;  %v705_v20 = vld [vmem:[%s1162_s9] sm:$0xff] }
 0x22a   : > { %721 = vperm.xlu1 %895, %v703_v14   ;;  %711 = vperm.xlu0 %894, %v701_v15   ;;  %v699_v22 = vld [vmem:[%s1031_s26 + $0x10] sm:$0xff]  ;;  %v697_v24 = vld [vmem:[%s1031_s26] sm:$0xff]  ;;  %v708_v29 = vld [vmem:[%s1162_s9 + $0x18] sm:$0xff] }
 0x22b   : > { %v706_v30 = vld [vmem:[%s1162_s9 + $0x8] sm:$0xff] }
 0x22c   : > { %v698_v34 = vld [vmem:[%s1031_s26 + $0x8] sm:$0xff] }
 0x22e   : > { %v700_v32 = vld [vmem:[%s1031_s26 + $0x18] sm:$0xff] }
 0x232   : > { %726 = vperm.xlu1 %895, %v704_v17   ;;  %716 = vperm.xlu0 %894, %v702_v18  }
 0x29c   : > { %v722_v21 = vpop.permute.xlu1 %721  ;;  %v712_v23 = vpop.permute.xlu0 %711 }
 0x29d   : > { %v731_v25 = vmul.f32 %v722_v21, %v707_v19  ;;  %v729_v26 = vmul.f32 %v712_v23, %v705_v20 }
 0x29f   : > { %v735_v27 = vsub.f32 %v699_v22, %v731_v25  ;;  %v733_v28 = vsub.f32 %v697_v24, %v729_v26 }
 0x2a1   : > { %739 = vst.msk [vmem:[%s1031_s26 + $0x10] sm:$0xff] %vm419_vm3, %v735_v27 }
 0x2a2   : > { %737 = vst.msk [vmem:[%s1031_s26] sm:$0xff] %vm419_vm3, %v733_v28 }
 0x2a4   : > { %v727_v31 = vpop.permute.xlu1 %726  ;;  %v717_v33 = vpop.permute.xlu0 %716 }
 0x2a5   : > { %v732_v35 = vmul.f32 %v727_v31, %v708_v29  ;;  %v730_v36 = vmul.f32 %v717_v33, %v706_v30 }
 0x2a7   : > { %v736_v37 = vsub.f32 %v700_v32, %v732_v35  ;;  %v734_v38 = vsub.f32 %v698_v34, %v730_v36 }
 0x2a9   : > { %740 = vst.msk [vmem:[%s1031_s26 + $0x18] sm:$0xff] %vm419_vm3, %v736_v37 }
 0x2aa   : > { %738 = vst.msk [vmem:[%s1031_s26 + $0x8] sm:$0xff] %vm419_vm3, %v734_v38 }
 0x2ab PF: > { %s20_s17 = sadd.s32 1, %s934_s17   ;;  %s1164_s13 = smov %s926_s15 }
 0x2ac   : > { %p17_p9 = scmp.ge.s32.totalorder %s20_s17, 6   ;;  %s1165_s14 = smov %s930_s16 }
 0x2ad   : > { %s1166_s15 = smov %s1169_s18  ;;  %s1167_s16 = smov %s1173_s19 }
 0x2ae   :  { %19 = sbr.rel (!%p17_p9) target bundleno = 3 (0x3), region = 98 }

</bundles_post_ra>
